<compile_context>
chip_gen: v7x
topology: tpu7x:2x2x1
jax: 0.10.0
libtpu: 0.0.40
codegen_flags: <defaults>
</compile_context>

<pallas_src>
import math
from functools import partial

import jax
import jax.numpy as jnp
import numpy as np
from jax.experimental import pallas as pl
from jax.experimental.pallas import tpu as pltpu

EPS = 1e-5
LAST_CONV_SIZE = (23, 46)
IN_FEATURES = LAST_CONV_SIZE[0] * LAST_CONV_SIZE[1]       # 1058
LAYER_DIMS = (IN_FEATURES, 256, 128, 64, 3)
VMEM_LIMIT_BYTES = 32 * 1024 * 1024


# --------------------------------------------------------------------------- #
# Kernel bodies
# --------------------------------------------------------------------------- #
def _col_stats_block(h):
    """(8, F) block: row0 = column sums, row1 = column sums of squares.

    The column reductions are done as (1, TB) @ (TB, F) matmuls so the reduce
    runs on the MXU (which has slack here) instead of the VPU/XLU.
    """
    tb, f = h.shape
    ones = jnp.ones((1, tb), jnp.float32)
    cs = jnp.dot(ones, h, preferred_element_type=jnp.float32)        # (1, F)
    css = jnp.dot(ones, h * h, preferred_element_type=jnp.float32)   # (1, F)
    pad = jnp.zeros((6, f), jnp.float32)
    return jnp.concatenate([cs, css, pad], axis=0)                   # (8, F)


def _linear_stats_kernel(x_ref, w_ref, b_ref, h_ref, stats_ref):
    """h = x @ W + b (bf16 in, f32 acc); emit per-tile column stats of h."""
    h = jnp.dot(x_ref[...], w_ref[...],
                preferred_element_type=jnp.float32) + b_ref[...]
    h_ref[...] = h
    stats_ref[...] = _col_stats_block(h)


def _bn_relu_linear_stats_kernel(h_in_ref, sc_ref, sh_ref, w_ref, b_ref,
                                 h_ref, stats_ref):
    """a = relu(h_in*scale + shift); h = a @ W + b; emit column stats of h."""
    a = jnp.maximum(h_in_ref[...] * sc_ref[...] + sh_ref[...], 0.0)   # f32
    h = jnp.dot(a.astype(jnp.bfloat16), w_ref[...],
                preferred_element_type=jnp.float32) + b_ref[...]
    h_ref[...] = h
    stats_ref[...] = _col_stats_block(h)


def _bn_relu_linear_sigmoid_kernel(h_in_ref, sc_ref, sh_ref, w_ref, b_ref,
                                   o_ref):
    a = jnp.maximum(h_in_ref[...] * sc_ref[...] + sh_ref[...], 0.0)   # f32
    y = jnp.dot(a.astype(jnp.bfloat16), w_ref[...],
                preferred_element_type=jnp.float32) + b_ref[...]
    o_ref[...] = jax.nn.sigmoid(y)


# --------------------------------------------------------------------------- #
# pallas_call wrappers
# --------------------------------------------------------------------------- #
def _compiler_params():
    return pltpu.CompilerParams(
        dimension_semantics=("parallel",),       # batch tiles are independent
        vmem_limit_bytes=VMEM_LIMIT_BYTES,
    )


def _linear_with_stats(x, w, b, tb, nt):
    batch, fin = x.shape
    fout = w.shape[1]
    cost = pl.CostEstimate(
        flops=2 * batch * fin * fout + 4 * batch * fout,
        transcendentals=0,
        bytes_accessed=batch * fin * x.dtype.itemsize + fin * fout * 2
        + batch * fout * 4 + nt * 8 * fout * 4,
    )
    return pl.pallas_call(
        _linear_stats_kernel,
        grid=(nt,),
        in_specs=[
            pl.BlockSpec((tb, fin), lambda i: (i, 0)),         # streamed x tile
            pl.BlockSpec((fin, fout), lambda i: (0, 0)),       # resident weight
            pl.BlockSpec((1, fout), lambda i: (0, 0)),         # resident bias
        ],
        out_specs=[
            pl.BlockSpec((tb, fout), lambda i: (i, 0)),        # pre-BN activations
            pl.BlockSpec((None, 8, fout), lambda i: (i, 0, 0)),  # per-tile stats
        ],
        out_shape=[
            jax.ShapeDtypeStruct((batch, fout), jnp.float32),
            jax.ShapeDtypeStruct((nt, 8, fout), jnp.float32),
        ],
        compiler_params=_compiler_params(),
        cost_estimate=cost,
    )(x, w, b)


def _bn_relu_linear_with_stats(h_in, scale, shift, w, b, tb, nt):
    batch, fin = h_in.shape
    fout = w.shape[1]
    cost = pl.CostEstimate(
        flops=2 * batch * fin * fout + 4 * batch * fout + 3 * batch * fin,
        transcendentals=0,
        bytes_accessed=batch * fin * 4 + fin * fout * 2
        + batch * fout * 4 + nt * 8 * fout * 4,
    )
    return pl.pallas_call(
        _bn_relu_linear_stats_kernel,
        grid=(nt,),
        in_specs=[
            pl.BlockSpec((tb, fin), lambda i: (i, 0)),
            pl.BlockSpec((1, fin), lambda i: (0, 0)),          # fused BN scale
            pl.BlockSpec((1, fin), lambda i: (0, 0)),          # fused BN shift
            pl.BlockSpec((fin, fout), lambda i: (0, 0)),
            pl.BlockSpec((1, fout), lambda i: (0, 0)),
        ],
        out_specs=[
            pl.BlockSpec((tb, fout), lambda i: (i, 0)),
            pl.BlockSpec((None, 8, fout), lambda i: (i, 0, 0)),
        ],
        out_shape=[
            jax.ShapeDtypeStruct((batch, fout), jnp.float32),
            jax.ShapeDtypeStruct((nt, 8, fout), jnp.float32),
        ],
        compiler_params=_compiler_params(),
        cost_estimate=cost,
    )(h_in, scale, shift, w, b)


def _bn_relu_linear_sigmoid(h_in, scale, shift, w, b, tb, nt):
    batch, fin = h_in.shape
    fout = w.shape[1]
    cost = pl.CostEstimate(
        flops=2 * batch * fin * fout + 3 * batch * fin,
        transcendentals=batch * fout,
        bytes_accessed=batch * fin * 4 + fin * fout * 2 + batch * fout * 4,
    )
    return pl.pallas_call(
        _bn_relu_linear_sigmoid_kernel,
        grid=(nt,),
        in_specs=[
            pl.BlockSpec((tb, fin), lambda i: (i, 0)),
            pl.BlockSpec((1, fin), lambda i: (0, 0)),
            pl.BlockSpec((1, fin), lambda i: (0, 0)),
            pl.BlockSpec((fin, fout), lambda i: (0, 0)),
            pl.BlockSpec((1, fout), lambda i: (0, 0)),
        ],
        # Intentionally NOT padded to 128 lanes: 12 B/row of masked stores is
        # cheaper than 40x writeback inflation.
        out_specs=pl.BlockSpec((tb, fout), lambda i: (i, 0)),
        out_shape=jax.ShapeDtypeStruct((batch, fout), jnp.float32),
        compiler_params=_compiler_params(),
        cost_estimate=cost,
    )(h_in, scale, shift, w, b)


# --------------------------------------------------------------------------- #
# Host-side glue
# --------------------------------------------------------------------------- #
def _bn_scale_shift(stats, batch, gamma, beta):
    """Reduce per-tile partial stats and fold BN into a fused scale/shift."""
    col_sum = jnp.sum(stats[:, 0, :], axis=0)                # (F,)
    col_sumsq = jnp.sum(stats[:, 1, :], axis=0)               # (F,)
    mu = col_sum / batch
    var = jnp.maximum(col_sumsq / batch - mu * mu, 0.0)       # biased batch var
    inv = jax.lax.rsqrt(var + EPS)
    scale = gamma * inv                                       # (1, F)
    shift = beta - mu * scale                                 # (1, F)
    return scale, shift


def _default_max_batch_tile():
    # v7x: 64 MiB physical VMEM -> cap at 1024 rows.  v5e/v6e: 128 MiB -> 2048
    # rows amortize the per-grid-step overhead better.
    try:
        vmem = getattr(pltpu.get_tpu_info(), "vmem_capacity_bytes", None)
        if vmem is not None and vmem >= 100 * 1024 * 1024:
            return 2048
    except Exception:
        pass
    return 1024


def _pick_batch_tile(batch, max_tile):
    if batch <= max_tile:
        return batch          # single full-batch block is always a legal block
    for tb in range(min(max_tile, batch), 7, -1):
        if tb % 8 == 0 and batch % tb == 0:
            return tb
    # TODO(synk): batches > max_tile with no multiple-of-8 divisor would need
    # zero-padding plus masked statistics; not required for this use case.
    raise ValueError(
        f"batch={batch} > max_tile={max_tile} has no batch tile that is a "
        "multiple of 8 and divides the batch (training-mode BatchNorm needs "
        "exact tiles).")


@partial(jax.jit, static_argnames=("max_tile",))
def fc_trajectory_decoder(x, params, max_tile=None):
    """Forward pass of FCTrajectoryDecoder (training-mode BatchNorm)."""
    batch, fin = x.shape
    if fin != IN_FEATURES:
        raise ValueError(f"expected {IN_FEATURES} input features, got {fin}")
    if max_tile is None:
        max_tile = _default_max_batch_tile()
    tb = _pick_batch_tile(batch, max_tile)
    nt = batch // tb

    x16 = x.astype(jnp.bfloat16)                  # halves the HBM read of x
    w1 = params["w1"].astype(jnp.bfloat16)
    w2 = params["w2"].astype(jnp.bfloat16)
    w3 = params["w3"].astype(jnp.bfloat16)
    w4 = params["w4"].astype(jnp.bfloat16)

    h1, st1 = _linear_with_stats(x16, w1, params["b1"], tb, nt)
    sc1, sh1 = _bn_scale_shift(st1, batch, params["g1"], params["be1"])

    h2, st2 = _bn_relu_linear_with_stats(h1, sc1, sh1, w2, params["b2"], tb, nt)
    sc2, sh2 = _bn_scale_shift(st2, batch, params["g2"], params["be2"])

    h3, st3 = _bn_relu_linear_with_stats(h2, sc2, sh2, w3, params["b3"], tb, nt)
    sc3, sh3 = _bn_scale_shift(st3, batch, params["g3"], params["be3"])

    return _bn_relu_linear_sigmoid(h3, sc3, sh3, w4, params["b4"], tb, nt)


# --------------------------------------------------------------------------- #
# Parameters & pure-JAX reference
# --------------------------------------------------------------------------- #
def init_params(key):
    """PyTorch-style init. Linear weights stored pre-transposed as (in, out)."""
    dims = list(zip(LAYER_DIMS[:-1], LAYER_DIMS[1:]))
    keys = jax.random.split(key, 2 * len(dims))
    params = {}
    for n, (fin, fout) in enumerate(dims, start=1):
        bound = 1.0 / math.sqrt(fin)
        params[f"w{n}"] = jax.random.uniform(
            keys[2 * n - 2], (fin, fout), jnp.float32, -bound, bound)
        params[f"b{n}"] = jax.random.uniform(
            keys[2 * n - 1], (1, fout), jnp.float32, -bound, bound)
        if n < len(dims):   # BN after the first three Linear layers
            params[f"g{n}"] = jnp.ones((1, fout), jnp.float32)
            params[f"be{n}"] = jnp.zeros((1, fout), jnp.float32)
    return params


def reference(x, p, bf16_matmul=True):
    """Pure-JAX forward pass (training-mode BN, biased variance, eps=1e-5)."""
    def dot(a, w):
        if bf16_matmul:
            return jnp.dot(a.astype(jnp.bfloat16), w.astype(jnp.bfloat16),
                           preferred_element_type=jnp.float32)
        return jnp.dot(a, w, preferred_element_type=jnp.float32)

    def bn_relu(h, g, be):
        mu = jnp.mean(h, axis=0, keepdims=True)
        var = jnp.mean((h - mu) ** 2, axis=0, keepdims=True)
        return jnp.maximum((h - mu) * jax.lax.rsqrt(var + EPS) * g + be, 0.0)

    h = dot(x, p["w1"]) + p["b1"]
    h = bn_relu(h, p["g1"], p["be1"])
    h = dot(h, p["w2"]) + p["b2"]
    h = bn_relu(h, p["g2"], p["be2"])
    h = dot(h, p["w3"]) + p["b3"]
    h = bn_relu(h, p["g3"], p["be3"])
    h = dot(h, p["w4"]) + p["b4"]
    return jax.nn.sigmoid(h)


# --------------------------------------------------------------------------- #
if __name__ == "__main__":
    key = jax.random.PRNGKey(0)
    k_x, k_p, k_x2 = jax.random.split(key, 3)

    params = init_params(k_p)

    # Small batch, but force a 4-tile grid (max_tile=16) so the batch-tiled,
    # cross-tile-BatchNorm path is exercised.
    B = 64
    x = jax.random.normal(k_x, (B, IN_FEATURES), jnp.float32)
    out = jax.block_until_ready(fc_trajectory_decoder(x, params, max_tile=16))
    assert out.shape == (B, 3)

    np.testing.assert_allclose(
        np.asarray(out), np.asarray(reference(x, params, bf16_matmul=True)),
        rtol=1e-3, atol=1e-3)
    np.testing.assert_allclose(
        np.asarray(out), np.asarray(reference(x, params, bf16_matmul=False)),
        rtol=0.0, atol=2e-2)

    # Odd batch (not a multiple of 8) -> single full-batch tile path.
    x2 = jax.random.normal(k_x2, (10, IN_FEATURES), jnp.float32)
    out2 = jax.block_until_ready(fc_trajectory_decoder(x2, params))
    np.testing.assert_allclose(
        np.asarray(out2), np.asarray(reference(x2, params, bf16_matmul=True)),
        rtol=1e-3, atol=1e-3)

    print("KERNEL_OK")
</pallas_src>

<mosaic_0001>
module attributes {stable_mosaic.version = 11 : i64} {
  func.func @_linear_stats_kernel(%arg0: i32, %arg1: memref<16x1058xbf16, #tpu.memory_space<vmem>>, %arg2: memref<1058x256xbf16, #tpu.memory_space<vmem>>, %arg3: memref<1x256xf32, #tpu.memory_space<vmem>>, %arg4: memref<16x256xf32, #tpu.memory_space<vmem>>, %arg5: memref<1x8x256xf32, #tpu.memory_space<vmem>>) attributes {dimension_semantics = [#tpu.dimension_semantics<parallel>], iteration_bounds = array<i64: 4>, scalar_prefetch = 0 : i64, scratch_operands = 0 : i64, tpu.core_type = #tpu.core_type<tc>, window_params = [{transform_indices = @transform_0, window_bounds = array<i64: 16, 1058>}, {pipeline_mode = #tpu.pipeline_mode<synchronous>, transform_indices = @transform_1, window_bounds = array<i64: 1058, 256>}, {pipeline_mode = #tpu.pipeline_mode<synchronous>, transform_indices = @transform_2, window_bounds = array<i64: 1, 256>}, {transform_indices = @transform_3, window_bounds = array<i64: 16, 256>}, {transform_indices = @transform_4, window_bounds = array<i64: 1, 8, 256>}]} {
    %c0 = arith.constant 0 : index
    %c0_0 = arith.constant 0 : index
    %0 = vector.load %arg1[%c0, %c0_0] : memref<16x1058xbf16, #tpu.memory_space<vmem>>, vector<16x1058xbf16>
    %c0_1 = arith.constant 0 : index
    %c0_2 = arith.constant 0 : index
    %1 = vector.load %arg2[%c0_1, %c0_2] : memref<1058x256xbf16, #tpu.memory_space<vmem>>, vector<1058x256xbf16>
    %cst = arith.constant dense<0.000000e+00> : vector<16x256xf32>
    %2 = tpu.matmul %0, %1, %cst {dimension_numbers = #tpu.dot_dimension_numbers<[1], [0], [0], [1], [0, 0, 1, 1], [], []>} : vector<16x1058xbf16>, vector<1058x256xbf16>, vector<16x256xf32> -> vector<16x256xf32>
    %c0_3 = arith.constant 0 : index
    %c0_4 = arith.constant 0 : index
    %3 = vector.load %arg3[%c0_3, %c0_4] : memref<1x256xf32, #tpu.memory_space<vmem>>, vector<1x256xf32>
    %4 = vector.broadcast %3 : vector<1x256xf32> to vector<16x256xf32>
    %5 = arith.addf %2, %4 : vector<16x256xf32>
    %c0_5 = arith.constant 0 : index
    %c0_6 = arith.constant 0 : index
    %6 = vector.load %arg4[%c0_5, %c0_6] : memref<16x256xf32, #tpu.memory_space<vmem>>, vector<16x256xf32>
    tpu.vector_store %arg4[%c0_5, %c0_6], %5 {strides = array<i32>} : memref<16x256xf32, #tpu.memory_space<vmem>>, vector<16x256xf32>,
    %cst_7 = arith.constant 1.000000e+00 : f32
    %7 = vector.broadcast %cst_7 : f32 to vector<1x16xf32>
    %cst_8 = arith.constant dense<0.000000e+00> : vector<1x256xf32>
    %8 = tpu.matmul %7, %5, %cst_8 {dimension_numbers = #tpu.dot_dimension_numbers<[1], [0], [0], [1], [0, 0, 1, 1], [], []>} : vector<1x16xf32>, vector<16x256xf32>, vector<1x256xf32> -> vector<1x256xf32>
    %9 = arith.mulf %5, %5 : vector<16x256xf32>
    %cst_9 = arith.constant dense<0.000000e+00> : vector<1x256xf32>
    %10 = tpu.matmul %7, %9, %cst_9 {dimension_numbers = #tpu.dot_dimension_numbers<[1], [0], [0], [1], [0, 0, 1, 1], [], []>} : vector<1x16xf32>, vector<16x256xf32>, vector<1x256xf32> -> vector<1x256xf32>
    %cst_10 = arith.constant 0.000000e+00 : f32
    %11 = vector.broadcast %cst_10 : f32 to vector<6x256xf32>
    %12 = tpu.concatenate %8, %10, %11 in 0 : vector<1x256xf32>, vector<1x256xf32>, vector<6x256xf32> -> vector<8x256xf32>
    %c0_11 = arith.constant 0 : index
    %c0_12 = arith.constant 0 : index
    %c0_13 = arith.constant 0 : index
    %13 = vector.load %arg5[%c0_11, %c0_12, %c0_13] : memref<1x8x256xf32, #tpu.memory_space<vmem>>, vector<1x8x256xf32>
    %14 = vector.shape_cast %13 : vector<1x8x256xf32> to vector<8x256xf32>
    %15 = vector.shape_cast %12 : vector<8x256xf32> to vector<1x8x256xf32>
    tpu.vector_store %arg5[%c0_11, %c0_12, %c0_13], %15 {strides = array<i32>} : memref<1x8x256xf32, #tpu.memory_space<vmem>>, vector<1x8x256xf32>,
    return
  }
  func.func @transform_0(%arg0: i32) -> (i32, i32) {
    %c0_i32 = arith.constant 0 : i32
    %c0_i32_0 = arith.constant 0 : i32
    return %arg0, %c0_i32 : i32, i32
  }
  func.func @transform_1(%arg0: i32) -> (i32, i32) {
    %c0_i32 = arith.constant 0 : i32
    %c0_i32_0 = arith.constant 0 : i32
    %c0_i32_1 = arith.constant 0 : i32
    return %c0_i32, %c0_i32_0 : i32, i32
  }
  func.func @transform_2(%arg0: i32) -> (i32, i32) {
    %c0_i32 = arith.constant 0 : i32
    %c0_i32_0 = arith.constant 0 : i32
    %c0_i32_1 = arith.constant 0 : i32
    return %c0_i32, %c0_i32_0 : i32, i32
  }
  func.func @transform_3(%arg0: i32) -> (i32, i32) {
    %c0_i32 = arith.constant 0 : i32
    %c0_i32_0 = arith.constant 0 : i32
    return %arg0, %c0_i32 : i32, i32
  }
  func.func @transform_4(%arg0: i32) -> (i32, i32, i32) {
    %c0_i32 = arith.constant 0 : i32
    %c0_i32_0 = arith.constant 0 : i32
    %c0_i32_1 = arith.constant 0 : i32
    return %arg0, %c0_i32, %c0_i32_0 : i32, i32, i32
  }
}

module attributes {stable_mosaic.version = 11 : i64} {
  func.func @_bn_relu_linear_stats_kernel(%arg0: i32, %arg1: memref<16x256xf32, #tpu.memory_space<vmem>>, %arg2: memref<1x256xf32, #tpu.memory_space<vmem>>, %arg3: memref<1x256xf32, #tpu.memory_space<vmem>>, %arg4: memref<256x128xbf16, #tpu.memory_space<vmem>>, %arg5: memref<1x128xf32, #tpu.memory_space<vmem>>, %arg6: memref<16x128xf32, #tpu.memory_space<vmem>>, %arg7: memref<1x8x128xf32, #tpu.memory_space<vmem>>) attributes {dimension_semantics = [#tpu.dimension_semantics<parallel>], iteration_bounds = array<i64: 4>, scalar_prefetch = 0 : i64, scratch_operands = 0 : i64, tpu.core_type = #tpu.core_type<tc>, window_params = [{transform_indices = @transform_0, window_bounds = array<i64: 16, 256>}, {pipeline_mode = #tpu.pipeline_mode<synchronous>, transform_indices = @transform_1, window_bounds = array<i64: 1, 256>}, {pipeline_mode = #tpu.pipeline_mode<synchronous>, transform_indices = @transform_2, window_bounds = array<i64: 1, 256>}, {pipeline_mode = #tpu.pipeline_mode<synchronous>, transform_indices = @transform_3, window_bounds = array<i64: 256, 128>}, {pipeline_mode = #tpu.pipeline_mode<synchronous>, transform_indices = @transform_4, window_bounds = array<i64: 1, 128>}, {transform_indices = @transform_5, window_bounds = array<i64: 16, 128>}, {transform_indices = @transform_6, window_bounds = array<i64: 1, 8, 128>}]} {
    %c0 = arith.constant 0 : index
    %c0_0 = arith.constant 0 : index
    %0 = vector.load %arg1[%c0, %c0_0] : memref<16x256xf32, #tpu.memory_space<vmem>>, vector<16x256xf32>
    %c0_1 = arith.constant 0 : index
    %c0_2 = arith.constant 0 : index
    %1 = vector.load %arg2[%c0_1, %c0_2] : memref<1x256xf32, #tpu.memory_space<vmem>>, vector<1x256xf32>
    %2 = vector.broadcast %1 : vector<1x256xf32> to vector<16x256xf32>
    %3 = arith.mulf %0, %2 : vector<16x256xf32>
    %c0_3 = arith.constant 0 : index
    %c0_4 = arith.constant 0 : index
    %4 = vector.load %arg3[%c0_3, %c0_4] : memref<1x256xf32, #tpu.memory_space<vmem>>, vector<1x256xf32>
    %5 = vector.broadcast %4 : vector<1x256xf32> to vector<16x256xf32>
    %6 = arith.addf %3, %5 : vector<16x256xf32>
    %cst = arith.constant 0.000000e+00 : f32
    %7 = vector.broadcast %cst : f32 to vector<16x256xf32>
    %8 = arith.maximumf %6, %7 : vector<16x256xf32>
    %9 = arith.truncf %8 : vector<16x256xf32> to vector<16x256xbf16>
    %c0_5 = arith.constant 0 : index
    %c0_6 = arith.constant 0 : index
    %10 = vector.load %arg4[%c0_5, %c0_6] : memref<256x128xbf16, #tpu.memory_space<vmem>>, vector<256x128xbf16>
    %cst_7 = arith.constant dense<0.000000e+00> : vector<16x128xf32>
    %11 = tpu.matmul %9, %10, %cst_7 {dimension_numbers = #tpu.dot_dimension_numbers<[1], [0], [0], [1], [0, 0, 1, 1], [], []>} : vector<16x256xbf16>, vector<256x128xbf16>, vector<16x128xf32> -> vector<16x128xf32>
    %c0_8 = arith.constant 0 : index
    %c0_9 = arith.constant 0 : index
    %12 = vector.load %arg5[%c0_8, %c0_9] : memref<1x128xf32, #tpu.memory_space<vmem>>, vector<1x128xf32>
    %13 = vector.broadcast %12 : vector<1x128xf32> to vector<16x128xf32>
    %14 = arith.addf %11, %13 : vector<16x128xf32>
    %c0_10 = arith.constant 0 : index
    %c0_11 = arith.constant 0 : index
    %15 = vector.load %arg6[%c0_10, %c0_11] : memref<16x128xf32, #tpu.memory_space<vmem>>, vector<16x128xf32>
    tpu.vector_store %arg6[%c0_10, %c0_11], %14 {strides = array<i32>} : memref<16x128xf32, #tpu.memory_space<vmem>>, vector<16x128xf32>,
    %cst_12 = arith.constant 1.000000e+00 : f32
    %16 = vector.broadcast %cst_12 : f32 to vector<1x16xf32>
    %cst_13 = arith.constant dense<0.000000e+00> : vector<1x128xf32>
    %17 = tpu.matmul %16, %14, %cst_13 {dimension_numbers = #tpu.dot_dimension_numbers<[1], [0], [0], [1], [0, 0, 1, 1], [], []>} : vector<1x16xf32>, vector<16x128xf32>, vector<1x128xf32> -> vector<1x128xf32>
    %18 = arith.mulf %14, %14 : vector<16x128xf32>
    %cst_14 = arith.constant dense<0.000000e+00> : vector<1x128xf32>
    %19 = tpu.matmul %16, %18, %cst_14 {dimension_numbers = #tpu.dot_dimension_numbers<[1], [0], [0], [1], [0, 0, 1, 1], [], []>} : vector<1x16xf32>, vector<16x128xf32>, vector<1x128xf32> -> vector<1x128xf32>
    %cst_15 = arith.constant 0.000000e+00 : f32
    %20 = vector.broadcast %cst_15 : f32 to vector<6x128xf32>
    %21 = tpu.concatenate %17, %19, %20 in 0 : vector<1x128xf32>, vector<1x128xf32>, vector<6x128xf32> -> vector<8x128xf32>
    %c0_16 = arith.constant 0 : index
    %c0_17 = arith.constant 0 : index
    %c0_18 = arith.constant 0 : index
    %22 = vector.load %arg7[%c0_16, %c0_17, %c0_18] : memref<1x8x128xf32, #tpu.memory_space<vmem>>, vector<1x8x128xf32>
    %23 = vector.shape_cast %22 : vector<1x8x128xf32> to vector<8x128xf32>
    %24 = vector.shape_cast %21 : vector<8x128xf32> to vector<1x8x128xf32>
    tpu.vector_store %arg7[%c0_16, %c0_17, %c0_18], %24 {strides = array<i32>} : memref<1x8x128xf32, #tpu.memory_space<vmem>>, vector<1x8x128xf32>,
    return
  }
  func.func @transform_0(%arg0: i32) -> (i32, i32) {
    %c0_i32 = arith.constant 0 : i32
    %c0_i32_0 = arith.constant 0 : i32
    return %arg0, %c0_i32 : i32, i32
  }
  func.func @transform_1(%arg0: i32) -> (i32, i32) {
    %c0_i32 = arith.constant 0 : i32
    %c0_i32_0 = arith.constant 0 : i32
    %c0_i32_1 = arith.constant 0 : i32
    return %c0_i32, %c0_i32_0 : i32, i32
  }
  func.func @transform_2(%arg0: i32) -> (i32, i32) {
    %c0_i32 = arith.constant 0 : i32
    %c0_i32_0 = arith.constant 0 : i32
    %c0_i32_1 = arith.constant 0 : i32
    return %c0_i32, %c0_i32_0 : i32, i32
  }
  func.func @transform_3(%arg0: i32) -> (i32, i32) {
    %c0_i32 = arith.constant 0 : i32
    %c0_i32_0 = arith.constant 0 : i32
    %c0_i32_1 = arith.constant 0 : i32
    return %c0_i32, %c0_i32_0 : i32, i32
  }
  func.func @transform_4(%arg0: i32) -> (i32, i32) {
    %c0_i32 = arith.constant 0 : i32
    %c0_i32_0 = arith.constant 0 : i32
    %c0_i32_1 = arith.constant 0 : i32
    return %c0_i32, %c0_i32_0 : i32, i32
  }
  func.func @transform_5(%arg0: i32) -> (i32, i32) {
    %c0_i32 = arith.constant 0 : i32
    %c0_i32_0 = arith.constant 0 : i32
    return %arg0, %c0_i32 : i32, i32
  }
  func.func @transform_6(%arg0: i32) -> (i32, i32, i32) {
    %c0_i32 = arith.constant 0 : i32
    %c0_i32_0 = arith.constant 0 : i32
    %c0_i32_1 = arith.constant 0 : i32
    return %arg0, %c0_i32, %c0_i32_0 : i32, i32, i32
  }
}

module attributes {stable_mosaic.version = 11 : i64} {
  func.func @_bn_relu_linear_stats_kernel(%arg0: i32, %arg1: memref<16x128xf32, #tpu.memory_space<vmem>>, %arg2: memref<1x128xf32, #tpu.memory_space<vmem>>, %arg3: memref<1x128xf32, #tpu.memory_space<vmem>>, %arg4: memref<128x64xbf16, #tpu.memory_space<vmem>>, %arg5: memref<1x64xf32, #tpu.memory_space<vmem>>, %arg6: memref<16x64xf32, #tpu.memory_space<vmem>>, %arg7: memref<1x8x64xf32, #tpu.memory_space<vmem>>) attributes {dimension_semantics = [#tpu.dimension_semantics<parallel>], iteration_bounds = array<i64: 4>, scalar_prefetch = 0 : i64, scratch_operands = 0 : i64, tpu.core_type = #tpu.core_type<tc>, window_params = [{transform_indices = @transform_0, window_bounds = array<i64: 16, 128>}, {pipeline_mode = #tpu.pipeline_mode<synchronous>, transform_indices = @transform_1, window_bounds = array<i64: 1, 128>}, {pipeline_mode = #tpu.pipeline_mode<synchronous>, transform_indices = @transform_2, window_bounds = array<i64: 1, 128>}, {pipeline_mode = #tpu.pipeline_mode<synchronous>, transform_indices = @transform_3, window_bounds = array<i64: 128, 64>}, {pipeline_mode = #tpu.pipeline_mode<synchronous>, transform_indices = @transform_4, window_bounds = array<i64: 1, 64>}, {transform_indices = @transform_5, window_bounds = array<i64: 16, 64>}, {transform_indices = @transform_6, window_bounds = array<i64: 1, 8, 64>}]} {
    %c0 = arith.constant 0 : index
    %c0_0 = arith.constant 0 : index
    %0 = vector.load %arg1[%c0, %c0_0] : memref<16x128xf32, #tpu.memory_space<vmem>>, vector<16x128xf32>
    %c0_1 = arith.constant 0 : index
    %c0_2 = arith.constant 0 : index
    %1 = vector.load %arg2[%c0_1, %c0_2] : memref<1x128xf32, #tpu.memory_space<vmem>>, vector<1x128xf32>
    %2 = vector.broadcast %1 : vector<1x128xf32> to vector<16x128xf32>
    %3 = arith.mulf %0, %2 : vector<16x128xf32>
    %c0_3 = arith.constant 0 : index
    %c0_4 = arith.constant 0 : index
    %4 = vector.load %arg3[%c0_3, %c0_4] : memref<1x128xf32, #tpu.memory_space<vmem>>, vector<1x128xf32>
    %5 = vector.broadcast %4 : vector<1x128xf32> to vector<16x128xf32>
    %6 = arith.addf %3, %5 : vector<16x128xf32>
    %cst = arith.constant 0.000000e+00 : f32
    %7 = vector.broadcast %cst : f32 to vector<16x128xf32>
    %8 = arith.maximumf %6, %7 : vector<16x128xf32>
    %9 = arith.truncf %8 : vector<16x128xf32> to vector<16x128xbf16>
    %c0_5 = arith.constant 0 : index
    %c0_6 = arith.constant 0 : index
    %10 = vector.load %arg4[%c0_5, %c0_6] : memref<128x64xbf16, #tpu.memory_space<vmem>>, vector<128x64xbf16>
    %cst_7 = arith.constant dense<0.000000e+00> : vector<16x64xf32>
    %11 = tpu.matmul %9, %10, %cst_7 {dimension_numbers = #tpu.dot_dimension_numbers<[1], [0], [0], [1], [0, 0, 1, 1], [], []>} : vector<16x128xbf16>, vector<128x64xbf16>, vector<16x64xf32> -> vector<16x64xf32>
    %c0_8 = arith.constant 0 : index
    %c0_9 = arith.constant 0 : index
    %12 = vector.load %arg5[%c0_8, %c0_9] : memref<1x64xf32, #tpu.memory_space<vmem>>, vector<1x64xf32>
    %13 = vector.broadcast %12 : vector<1x64xf32> to vector<16x64xf32>
    %14 = arith.addf %11, %13 : vector<16x64xf32>
    %c0_10 = arith.constant 0 : index
    %c0_11 = arith.constant 0 : index
    %15 = vector.load %arg6[%c0_10, %c0_11] : memref<16x64xf32, #tpu.memory_space<vmem>>, vector<16x64xf32>
    tpu.vector_store %arg6[%c0_10, %c0_11], %14 {strides = array<i32>} : memref<16x64xf32, #tpu.memory_space<vmem>>, vector<16x64xf32>,
    %cst_12 = arith.constant 1.000000e+00 : f32
    %16 = vector.broadcast %cst_12 : f32 to vector<1x16xf32>
    %cst_13 = arith.constant dense<0.000000e+00> : vector<1x64xf32>
    %17 = tpu.matmul %16, %14, %cst_13 {dimension_numbers = #tpu.dot_dimension_numbers<[1], [0], [0], [1], [0, 0, 1, 1], [], []>} : vector<1x16xf32>, vector<16x64xf32>, vector<1x64xf32> -> vector<1x64xf32>
    %18 = arith.mulf %14, %14 : vector<16x64xf32>
    %cst_14 = arith.constant dense<0.000000e+00> : vector<1x64xf32>
    %19 = tpu.matmul %16, %18, %cst_14 {dimension_numbers = #tpu.dot_dimension_numbers<[1], [0], [0], [1], [0, 0, 1, 1], [], []>} : vector<1x16xf32>, vector<16x64xf32>, vector<1x64xf32> -> vector<1x64xf32>
    %cst_15 = arith.constant 0.000000e+00 : f32
    %20 = vector.broadcast %cst_15 : f32 to vector<6x64xf32>
    %21 = tpu.concatenate %17, %19, %20 in 0 : vector<1x64xf32>, vector<1x64xf32>, vector<6x64xf32> -> vector<8x64xf32>
    %c0_16 = arith.constant 0 : index
    %c0_17 = arith.constant 0 : index
    %c0_18 = arith.constant 0 : index
    %22 = vector.load %arg7[%c0_16, %c0_17, %c0_18] : memref<1x8x64xf32, #tpu.memory_space<vmem>>, vector<1x8x64xf32>
    %23 = vector.shape_cast %22 : vector<1x8x64xf32> to vector<8x64xf32>
    %24 = vector.shape_cast %21 : vector<8x64xf32> to vector<1x8x64xf32>
    tpu.vector_store %arg7[%c0_16, %c0_17, %c0_18], %24 {strides = array<i32>} : memref<1x8x64xf32, #tpu.memory_space<vmem>>, vector<1x8x64xf32>,
    return
  }
  func.func @transform_0(%arg0: i32) -> (i32, i32) {
    %c0_i32 = arith.constant 0 : i32
    %c0_i32_0 = arith.constant 0 : i32
    return %arg0, %c0_i32 : i32, i32
  }
  func.func @transform_1(%arg0: i32) -> (i32, i32) {
    %c0_i32 = arith.constant 0 : i32
    %c0_i32_0 = arith.constant 0 : i32
    %c0_i32_1 = arith.constant 0 : i32
    return %c0_i32, %c0_i32_0 : i32, i32
  }
  func.func @transform_2(%arg0: i32) -> (i32, i32) {
    %c0_i32 = arith.constant 0 : i32
    %c0_i32_0 = arith.constant 0 : i32
    %c0_i32_1 = arith.constant 0 : i32
    return %c0_i32, %c0_i32_0 : i32, i32
  }
  func.func @transform_3(%arg0: i32) -> (i32, i32) {
    %c0_i32 = arith.constant 0 : i32
    %c0_i32_0 = arith.constant 0 : i32
    %c0_i32_1 = arith.constant 0 : i32
    return %c0_i32, %c0_i32_0 : i32, i32
  }
  func.func @transform_4(%arg0: i32) -> (i32, i32) {
    %c0_i32 = arith.constant 0 : i32
    %c0_i32_0 = arith.constant 0 : i32
    %c0_i32_1 = arith.constant 0 : i32
    return %c0_i32, %c0_i32_0 : i32, i32
  }
  func.func @transform_5(%arg0: i32) -> (i32, i32) {
    %c0_i32 = arith.constant 0 : i32
    %c0_i32_0 = arith.constant 0 : i32
    return %arg0, %c0_i32 : i32, i32
  }
  func.func @transform_6(%arg0: i32) -> (i32, i32, i32) {
    %c0_i32 = arith.constant 0 : i32
    %c0_i32_0 = arith.constant 0 : i32
    %c0_i32_1 = arith.constant 0 : i32
    return %arg0, %c0_i32, %c0_i32_0 : i32, i32, i32
  }
}

module attributes {stable_mosaic.version = 11 : i64} {
  func.func @_bn_relu_linear_sigmoid_kernel(%arg0: i32, %arg1: memref<16x64xf32, #tpu.memory_space<vmem>>, %arg2: memref<1x64xf32, #tpu.memory_space<vmem>>, %arg3: memref<1x64xf32, #tpu.memory_space<vmem>>, %arg4: memref<64x3xbf16, #tpu.memory_space<vmem>>, %arg5: memref<1x3xf32, #tpu.memory_space<vmem>>, %arg6: memref<16x3xf32, #tpu.memory_space<vmem>>) attributes {dimension_semantics = [#tpu.dimension_semantics<parallel>], iteration_bounds = array<i64: 4>, scalar_prefetch = 0 : i64, scratch_operands = 0 : i64, tpu.core_type = #tpu.core_type<tc>, window_params = [{transform_indices = @transform_0, window_bounds = array<i64: 16, 64>}, {pipeline_mode = #tpu.pipeline_mode<synchronous>, transform_indices = @transform_1, window_bounds = array<i64: 1, 64>}, {pipeline_mode = #tpu.pipeline_mode<synchronous>, transform_indices = @transform_2, window_bounds = array<i64: 1, 64>}, {pipeline_mode = #tpu.pipeline_mode<synchronous>, transform_indices = @transform_3, window_bounds = array<i64: 64, 3>}, {pipeline_mode = #tpu.pipeline_mode<synchronous>, transform_indices = @transform_4, window_bounds = array<i64: 1, 3>}, {transform_indices = @transform_5, window_bounds = array<i64: 16, 3>}]} {
    %c0 = arith.constant 0 : index
    %c0_0 = arith.constant 0 : index
    %0 = vector.load %arg1[%c0, %c0_0] : memref<16x64xf32, #tpu.memory_space<vmem>>, vector<16x64xf32>
    %c0_1 = arith.constant 0 : index
    %c0_2 = arith.constant 0 : index
    %1 = vector.load %arg2[%c0_1, %c0_2] : memref<1x64xf32, #tpu.memory_space<vmem>>, vector<1x64xf32>
    %2 = vector.broadcast %1 : vector<1x64xf32> to vector<16x64xf32>
    %3 = arith.mulf %0, %2 : vector<16x64xf32>
    %c0_3 = arith.constant 0 : index
    %c0_4 = arith.constant 0 : index
    %4 = vector.load %arg3[%c0_3, %c0_4] : memref<1x64xf32, #tpu.memory_space<vmem>>, vector<1x64xf32>
    %5 = vector.broadcast %4 : vector<1x64xf32> to vector<16x64xf32>
    %6 = arith.addf %3, %5 : vector<16x64xf32>
    %cst = arith.constant 0.000000e+00 : f32
    %7 = vector.broadcast %cst : f32 to vector<16x64xf32>
    %8 = arith.maximumf %6, %7 : vector<16x64xf32>
    %9 = arith.truncf %8 : vector<16x64xf32> to vector<16x64xbf16>
    %c0_5 = arith.constant 0 : index
    %c0_6 = arith.constant 0 : index
    %10 = vector.load %arg4[%c0_5, %c0_6] : memref<64x3xbf16, #tpu.memory_space<vmem>>, vector<64x3xbf16>
    %cst_7 = arith.constant dense<0.000000e+00> : vector<16x3xf32>
    %11 = tpu.matmul %9, %10, %cst_7 {dimension_numbers = #tpu.dot_dimension_numbers<[1], [0], [0], [1], [0, 0, 1, 1], [], []>} : vector<16x64xbf16>, vector<64x3xbf16>, vector<16x3xf32> -> vector<16x3xf32>
    %c0_8 = arith.constant 0 : index
    %c0_9 = arith.constant 0 : index
    %12 = vector.load %arg5[%c0_8, %c0_9] : memref<1x3xf32, #tpu.memory_space<vmem>>, vector<1x3xf32>
    %13 = vector.broadcast %12 : vector<1x3xf32> to vector<16x3xf32>
    %14 = arith.addf %11, %13 : vector<16x3xf32>
    %15 = arith.negf %14 : vector<16x3xf32>
    %16 = math.exp %15 : vector<16x3xf32>
    %cst_10 = arith.constant 1.000000e+00 : f32
    %17 = vector.broadcast %cst_10 : f32 to vector<16x3xf32>
    %18 = arith.addf %17, %16 : vector<16x3xf32>
    %19 = arith.divf %17, %18 : vector<16x3xf32>
    %c0_11 = arith.constant 0 : index
    %c0_12 = arith.constant 0 : index
    %20 = vector.load %arg6[%c0_11, %c0_12] : memref<16x3xf32, #tpu.memory_space<vmem>>, vector<16x3xf32>
    tpu.vector_store %arg6[%c0_11, %c0_12], %19 {strides = array<i32>} : memref<16x3xf32, #tpu.memory_space<vmem>>, vector<16x3xf32>,
    return
  }
  func.func @transform_0(%arg0: i32) -> (i32, i32) {
    %c0_i32 = arith.constant 0 : i32
    %c0_i32_0 = arith.constant 0 : i32
    return %arg0, %c0_i32 : i32, i32
  }
  func.func @transform_1(%arg0: i32) -> (i32, i32) {
    %c0_i32 = arith.constant 0 : i32
    %c0_i32_0 = arith.constant 0 : i32
    %c0_i32_1 = arith.constant 0 : i32
    return %c0_i32, %c0_i32_0 : i32, i32
  }
  func.func @transform_2(%arg0: i32) -> (i32, i32) {
    %c0_i32 = arith.constant 0 : i32
    %c0_i32_0 = arith.constant 0 : i32
    %c0_i32_1 = arith.constant 0 : i32
    return %c0_i32, %c0_i32_0 : i32, i32
  }
  func.func @transform_3(%arg0: i32) -> (i32, i32) {
    %c0_i32 = arith.constant 0 : i32
    %c0_i32_0 = arith.constant 0 : i32
    %c0_i32_1 = arith.constant 0 : i32
    return %c0_i32, %c0_i32_0 : i32, i32
  }
  func.func @transform_4(%arg0: i32) -> (i32, i32) {
    %c0_i32 = arith.constant 0 : i32
    %c0_i32_0 = arith.constant 0 : i32
    %c0_i32_1 = arith.constant 0 : i32
    return %c0_i32, %c0_i32_0 : i32, i32
  }
  func.func @transform_5(%arg0: i32) -> (i32, i32) {
    %c0_i32 = arith.constant 0 : i32
    %c0_i32_0 = arith.constant 0 : i32
    return %arg0, %c0_i32 : i32, i32
  }
}

</mosaic_0001>

<bundles_post_ra>
// kernel: fc_trajectory_decoder.6
= control target key start
LH: loop header
LB: loop body
LE: loop exit
PB: predicated region body
PF: predicated region fallthrough
CT: control target
= control target key end

     0   :  { %s793_s21 = smov 0   ;;  %s875_s0 = inlined_call_operand.vmem [shape: f32[64,128], index: 0, kind: input, shape index: {}]   ;;  %s876_s1 = inlined_call_operand.vmem [shape: f32[1,128], index: 1, kind: input, shape index: {}]   ;;  %s877_s2 = inlined_call_operand.vmem [shape: f32[1,128], index: 2, kind: input, shape index: {}]   ;;  %s878_s3 = inlined_call_operand.vmem [shape: bf16[128,64], index: 3, kind: input, shape index: {}]   ;;  %s879_s4 = inlined_call_operand.vmem [shape: f32[1,64], index: 4, kind: input, shape index: {}]   ;;  %s880_s5 = inlined_call_operand.vmem [shape: f32[64,64], index: 5, kind: output, shape index: {0}]   ;;  %s881_s6 = inlined_call_operand.vmem [shape: f32[4,8,64], index: 6, kind: output, shape index: {1}]  }
   0x1 LB: > { %s799_s22 = sadd.s32 4294967295, %s752_s21   ;;  %p650_p0 = scmp.ge.s32.totalorder %s752_s21, 1  ;;  %s752_s21 = sphi %s793_s21, %s17_s21  }
   0x2   : > { %p216_p1 = scmp.lt.s32.totalorder %s752_s21, 5 }
   0x4   : > { %p217_p2 = pnand %p650_p0, %p216_p1 }
   0x5   : > { %v738_v0 = vld [vmem:[%s878_s3] sm:$0xff] (!%p217_p2)   ;;  %v754_v1 = vmov (!%p217_p2), 0.0   ;;  %v739_v2 = vld [vmem:[%s878_s3 + $0x8] sm:$0xff] (!%p217_p2)   ;;  %vm755_vm0 = vmmov (!%p217_p2), 0   ;;  %s651_s27 = sshll.u32 (!%p217_p2), %s799_s22, 1  ;;  %v740_v3 = vld [vmem:[%s878_s3 + $0x10] sm:$0xff] (!%p217_p2)  }
   0x6   : > { %220 = sbr.rel (%p217_p2) target bundleno = 480 (0x1e0), region = 40  ;;  %686 = vmatprep.subr.bf16.mxu0 (!%p217_p2), %v754_v1  ;;  %702 = vmatprep.mubr.msk.bf16.mxu0 (!%p217_p2), %vm755_vm0, %v754_v1  ;;  %p251_p3 = scmp.lt.s32.totalorder (!%p217_p2), %s651_s27, 7  ;;  %v741_v4 = vld [vmem:[%s878_s3 + $0x18] sm:$0xff] (!%p217_p2)   ;;  %v742_v5 = vld [vmem:[%s878_s3 + $0x20] sm:$0xff] (!%p217_p2)   ;;  %v743_v11 = vld [vmem:[%s878_s3 + $0x28] sm:$0xff] (!%p217_p2)   ;;  %v756_v20 = vmov (!%p217_p2), 0.0|0.0  }
   0x7   : > { %687 = vmatpush3.bf16.msra.mxu0 (!%p217_p2), %v738_v0  ;;  %710 = vmatprep.mubr.msk.f32.mxu1 (!%p217_p2), %vm755_vm0, %v754_v1  ;;  %v656_v8 = vld [vmem:[%s876_s1] ss:$0 sm:$0xff] (!%p217_p2)  ;;  %v744_v15 = vld [vmem:[%s878_s3 + $0x30] sm:$0xff] (!%p217_p2)   ;;  %v745_v18 = vld [vmem:[%s878_s3 + $0x38] sm:$0xff] (!%p217_p2)   ;;  %vm402_vm1 = vcmask (!%p217_p2), 523264   ;;  %vm405_vm2 = vcmask (!%p217_p2), 130048  }
   0x8   : > { %688 = vmatprep.subr.bf16.mxu0 (!%p217_p2), %v754_v1  ;;  %v657_v12 = vld [vmem:[%s877_s2] ss:$0 sm:$0xff] (!%p217_p2)  ;;  %720 = vmatprep.subr.bf16.mxu1 (!%p217_p2), %v756_v20  ;;  %v757_v32 = vmov (!%p217_p2), 1.0   ;;  %p262_p4 = scmp.lt.s32.totalorder (!%p217_p2), %s799_s22, 3  ;;  %vm554_vm3 = vcmask (!%p217_p2), 1040384   ;;  %vm556_vm4 = vcmask (!%p217_p2), 1041408  }
   0x9   : > { %v658_v21 = vld [vmem:[%s879_s4] ss:$0 sm:$0xff] (!%p217_p2) }
   0xb   : > { %689 = vmatpush3.bf16.msra.mxu0 (!%p217_p2), %v739_v2 }
   0xc   : > { %690 = vmatprep.subr.bf16.mxu0 (!%p217_p2), %v754_v1 }
   0xd   : > { %s883_s27 = smov (!%p251_p3, %s651_s27), 7  ;;  %s885_s22 = smov (!%p262_p4, %s799_s22), 3 }
   0xe   : > { %s652_s30 = sshll.u32 %s883_s27, 3  ;;  %s655_s27 = sshll.u32 %s885_s22, 3 }
   0xf   : > { %691 = vmatpush3.bf16.msra.mxu0 %v740_v3  ;;  %s254_s11 = scalar_lea.vmem %s875_s0, %s652_s30  ;;  %s260_s8 = scalar_lea.vmem %s880_s5, %s652_s30 }
  0x10   : > { %692 = vmatprep.subr.bf16.mxu0 %v754_v1  ;;  %v267_v6 = vld [vmem:[%s254_s11] sm:$0xff]  ;;  %v268_v7 = vld [vmem:[%s254_s11 + $0x8] sm:$0xff]  ;;  %s265_s10 = scalar_lea.vmem %s881_s6, %s655_s27 }
  0x11   : > { %v276_v9 = vmul.f32 %v656_v8, %v267_v6  ;;  %v277_v10 = vmul.f32 %v656_v8, %v268_v7 }
  0x13   : > { %693 = vmatpush3.bf16.msra.mxu0 %v741_v4  ;;  %v285_v13 = vadd.f32 %v657_v12, %v276_v9  ;;  %v286_v14 = vadd.f32 %v657_v12, %v277_v10 }
  0x14   : > { %694 = vmatprep.subr.bf16.mxu0 %v754_v1 }
  0x15   : > { %v287_v16 = vmax.f32 %v285_v13, 0.0  ;;  %v288_v17 = vmax.f32 %v286_v14, 0.0 }
  0x17   : > { %695 = vmatpush3.bf16.msra.mxu0 %v742_v5  ;;  %v289_v19 = vpack.c.bf16 %v288_v17, %v287_v16 }
  0x18   : > { %696 = vmatprep.subr.bf16.mxu0 %v754_v1 }
  0x1b   : > { %697 = vmatpush3.bf16.msra.mxu0 %v743_v11 }
  0x1c   : > { %698 = vmatprep.subr.bf16.mxu0 %v754_v1 }
  0x1f   : > { %699 = vmatpush3.bf16.msra.mxu0 %v744_v15 }
  0x20   : > { %700 = vmatprep.subr.bf16.mxu0 %v754_v1 }
  0x23   : > { %701 = vmatpush3.bf16.msra.mxu0 %v745_v18 }
  0x26   : > { %703 = vmatmul.mubr.bf16.vlgmr.msra.gmra.mrb[0].mxu0 %v289_v19 }
  0xf9   : > { %v395_v22 = vpop.f32.mrb[0].mxu0 }
  0xfa   : > { %v396_v23 = vadd.f32 %v658_v21, %v395_v22  ;;  %v704_v24 = vpop.f32.mrb[1].mxu0 }
  0xfb   : > { %v398_v25 = vpop.f32.mrb[2].mxu0 }
  0xfc   : > { %403 = vst.msk [vmem:[%s260_s8] sm:$0xff] %vm402_vm1, %v396_v23  ;;  %v399_v26 = vadd.f32 %v658_v21, %v398_v25  ;;  %v705_v27 = vpop.f32.mrb[3].mxu0  ;;  %v479_v28 = vmul.f32 %v396_v23, %v396_v23 }
  0xfe   : > { %404 = vst.msk [vmem:[%s260_s8 + $0x8] sm:$0xff] %vm402_vm1, %v399_v26  ;;  %v480_v29 = vmul.f32 %v399_v26, %v399_v26  ;;  %v721_v30 = vpack.c.bf16 %v399_v26, %v396_v23 }
 0x100   : > { %v724_v31 = vpack.c.bf16 %v480_v29, %v479_v28  ;;  %722 = vmatpush3.bf16.msra.mxu1 %v721_v30 }
 0x101   : > { %723 = vmatprep.subr.bf16.mxu1 %v756_v20 }
 0x103   : > { %711 = vmatmul.mubr.msk.f32.vlgmr.msra.gmra.mrb[0].mxu1 %vm405_vm2, %v757_v32 }
 0x104   : > { %725 = vmatpush3.bf16.msra.mxu1 %v724_v31  ;;  %717 = vmatprep.mubr.msk.f32.mxu1 %vm755_vm0, %v754_v1 }
 0x107   : > { %718 = vmatmul.mubr.msk.f32.vlgmr.msra.gmra.mrb[2].mxu1 %vm405_vm2, %v757_v32 }
 0x1d6   : > { %v475_v33 = vpop.f32.mrb[0].mxu1 }
 0x1d7   : > { %v712_v34 = vpop.f32.mrb[1].mxu1 }
 0x1da   : > { %v547_v35 = vpop.f32.mrb[2].mxu1 }
 0x1db   : > { %v552_v36 = vrot.slane %v547_v35, 7  ;;  %v719_v37 = vpop.f32.mrb[3].mxu1 }
 0x1dd   : > { %v555_v38 = vsel %vm554_vm3, %v475_v33, %v552_v36 }
 0x1de   : > { %v557_v39 = vsel %vm556_vm4, %v555_v38, 0.0 }
 0x1df   : > { %558 = vst.msk [vmem:[%s265_s10] sm:$0xff] %vm402_vm1, %v557_v39 }
 0x1e0 PF: > { %s17_s21 = sadd.s32 1, %s752_s21  }
 0x1e1   : > { %p14_p5 = scmp.ge.s32.totalorder %s17_s21, 6  }
 0x1e3   :  { %16 = sbr.rel (!%p14_p5) target bundleno = 1 (0x1), region = 82 }

// kernel: fc_trajectory_decoder.5
= control target key start
LH: loop header
LB: loop body
LE: loop exit
PB: predicated region body
PF: predicated region fallthrough
CT: control target
= control target key end

     0   :  { %s887_s21 = smov 0   ;;  %s975_s0 = inlined_call_operand.vmem [shape: f32[64,256], index: 0, kind: input, shape index: {}]   ;;  %s976_s1 = inlined_call_operand.vmem [shape: f32[1,256], index: 1, kind: input, shape index: {}]   ;;  %s977_s2 = inlined_call_operand.vmem [shape: f32[1,256], index: 2, kind: input, shape index: {}]   ;;  %s978_s3 = inlined_call_operand.vmem [shape: bf16[256,128], index: 3, kind: input, shape index: {}]   ;;  %s979_s4 = inlined_call_operand.vmem [shape: f32[1,128], index: 4, kind: input, shape index: {}]   ;;  %s980_s5 = inlined_call_operand.vmem [shape: f32[64,128], index: 5, kind: output, shape index: {0}]   ;;  %s981_s6 = inlined_call_operand.vmem [shape: f32[4,8,128], index: 6, kind: output, shape index: {1}]  }
   0x1 LB: > { %s893_s22 = sadd.s32 4294967295, %s846_s21   ;;  %p735_p0 = scmp.ge.s32.totalorder %s846_s21, 1  ;;  %s846_s21 = sphi %s887_s21, %s17_s21  }
   0x2   : > { %p217_p1 = scmp.lt.s32.totalorder %s846_s21, 5 }
   0x4   : > { %p218_p2 = pnand %p735_p0, %p217_p1 }
   0x5   : > { %v824_v0 = vld [vmem:[%s978_s3 + $0x40] sm:$0xff] (!%p218_p2)   ;;  %s736_s25 = sshll.u32 (!%p218_p2), %s893_s22, 1  ;;  %v826_v2 = vld [vmem:[%s978_s3 + $0x48] sm:$0xff] (!%p218_p2)   ;;  %v828_v4 = vld [vmem:[%s978_s3 + $0x50] sm:$0xff] (!%p218_p2)   ;;  %v276_v5 = vlaneseq (!%p218_p2)  ;;  %v848_v44 = vmov (!%p218_p2), 0.0|0.0   ;;  %vm849_vm0 = vmmov (!%p218_p2), 0  }
   0x6   : > { %221 = sbr.rel (%p218_p2) target bundleno = 483 (0x1e3), region = 40  ;;  %v825_v1 = vld [vmem:[%s978_s3] sm:$0xff] (!%p218_p2)   ;;  %764 = vmatprep.subr.bf16.mxu0 (!%p218_p2), %v824_v0  ;;  %p253_p3 = scmp.lt.s32.totalorder (!%p218_p2), %s736_s25, 7  ;;  %v827_v3 = vld [vmem:[%s978_s3 + $0x8] sm:$0xff] (!%p218_p2)   ;;  %v829_v6 = vld [vmem:[%s978_s3 + $0x10] sm:$0xff] (!%p218_p2)   ;;  %806 = vmatprep.subr.bf16.mxu1 (!%p218_p2), %v848_v44  ;;  %v850_v45 = vmov (!%p218_p2), 0.0  }
   0x7   : > { %765 = vmatpush3.bf16.msra.mxu0 (!%p218_p2), %v825_v1  ;;  %v830_v7 = vld [vmem:[%s978_s3 + $0x58] sm:$0xff] (!%p218_p2)   ;;  %v277_v8 = vshrl.u32 (!%p218_p2), %v276_v5, 7  ;;  %v832_v10 = vld [vmem:[%s978_s3 + $0x60] sm:$0xff] (!%p218_p2)   ;;  %v834_v14 = vld [vmem:[%s978_s3 + $0x68] sm:$0xff] (!%p218_p2)   ;;  %796 = vmatprep.mubr.msk.f32.mxu1 (!%p218_p2), %vm849_vm0, %v850_v45  ;;  %vm490_vm1 = vcmask (!%p218_p2), 130048   ;;  %v851_v59 = vmov (!%p218_p2), 1.0  }
   0x8   : > { %766 = vmatprep.subr.bf16.mxu0 (!%p218_p2), %v826_v2  ;;  %v831_v9 = vld [vmem:[%s978_s3 + $0x18] sm:$0xff] (!%p218_p2)   ;;  %v833_v13 = vld [vmem:[%s978_s3 + $0x20] sm:$0xff] (!%p218_p2)   ;;  %v835_v25 = vld [vmem:[%s978_s3 + $0x28] sm:$0xff] (!%p218_p2)   ;;  %p265_p4 = scmp.lt.s32.totalorder (!%p218_p2), %s893_s22, 3  ;;  %vm639_vm2 = vcmask (!%p218_p2), 1040384   ;;  %vm641_vm3 = vcmask (!%p218_p2), 1041408  }
   0x9   : > { %v278_v11 = vsub.s32 (!%p218_p2), 0, %v277_v8  ;;  %v282_v12 = vsub.s32 (!%p218_p2), 1, %v277_v8  ;;  %v274_v17 = vld [vmem:[%s976_s1] sm:$0x3] (!%p218_p2)  ;;  %v836_v30 = vld [vmem:[%s978_s3 + $0x70] sm:$0xff] (!%p218_p2)   ;;  %v838_v38 = vld [vmem:[%s978_s3 + $0x78] sm:$0xff] (!%p218_p2)  }
   0xa   : > { %v290_v20 = vld [vmem:[%s977_s2] sm:$0x3] (!%p218_p2)  ;;  %v837_v35 = vld [vmem:[%s978_s3 + $0x30] sm:$0xff] (!%p218_p2)   ;;  %v839_v42 = vld [vmem:[%s978_s3 + $0x38] sm:$0xff] (!%p218_p2)  }
   0xb   : > { %767 = vmatpush3.bf16.msra.mxu0 (!%p218_p2), %v827_v3  ;;  %v279_v18 = vrot.slane (!%p218_p2), %v274_v17, %v278_v11  ;;  %v283_v19 = vrot.slane (!%p218_p2), %v274_v17, %v282_v12  ;;  %v295_v23 = vrot.slane (!%p218_p2), %v290_v20, %v278_v11  ;;  %v299_v24 = vrot.slane (!%p218_p2), %v290_v20, %v282_v12  ;;  %v742_v47 = vld [vmem:[%s979_s4] ss:$0 sm:$0xff] (!%p218_p2) }
   0xc   : > { %768 = vmatprep.subr.bf16.mxu0 (!%p218_p2), %v828_v4 }
   0xd   : > { %s983_s25 = smov (!%p253_p3, %s736_s25), 7  ;;  %s985_s22 = smov (!%p265_p4, %s893_s22), 3 }
   0xe   : > { %s763_s14 = sshll.u32 %s983_s25, 4  ;;  %s740_s19 = sshll.u32 %s983_s25, 3 }
   0xf   : > { %769 = vmatpush3.bf16.msra.mxu0 %v829_v6  ;;  %s257_s23 = scalar_lea.vmem %s975_s0, %s763_s14  ;;  %s263_s27 = scalar_lea.vmem %s980_s5, %s740_s19 }
  0x10   : > { %770 = vmatprep.subr.bf16.mxu0 %v830_v7  ;;  %v271_v15 = vld [vmem:[%s257_s23 + $0x8] sm:$0xff]  ;;  %v273_v16 = vld [vmem:[%s257_s23 + $0x18] sm:$0xff]  ;;  %v270_v21 = vld [vmem:[%s257_s23] sm:$0xff]  ;;  %s741_s25 = sshll.u32 %s985_s22, 3 }
  0x11   : > { %v272_v22 = vld [vmem:[%s257_s23 + $0x10] sm:$0xff]  ;;  %v287_v26 = vmul.f32 %v283_v19, %v271_v15  ;;  %v289_v27 = vmul.f32 %v283_v19, %v273_v16  ;;  %v286_v28 = vmul.f32 %v279_v18, %v270_v21  ;;  %s268_s30 = scalar_lea.vmem %s981_s6, %s741_s25 }
  0x12   : > { %v288_v29 = vmul.f32 %v279_v18, %v272_v22 }
  0x13   : > { %771 = vmatpush3.bf16.msra.mxu0 %v831_v9  ;;  %v303_v31 = vadd.f32 %v299_v24, %v287_v26  ;;  %v305_v32 = vadd.f32 %v299_v24, %v289_v27  ;;  %v302_v33 = vadd.f32 %v295_v23, %v286_v28 }
  0x14   : > { %772 = vmatprep.subr.bf16.mxu0 %v832_v10  ;;  %v304_v34 = vadd.f32 %v295_v23, %v288_v29 }
  0x15   : > { %v307_v36 = vmax.f32 %v303_v31, 0.0  ;;  %v309_v37 = vmax.f32 %v305_v32, 0.0  ;;  %v306_v40 = vmax.f32 %v302_v33, 0.0 }
  0x16   : > { %v308_v41 = vmax.f32 %v304_v34, 0.0 }
  0x17   : > { %773 = vmatpush3.bf16.msra.mxu0 %v833_v13  ;;  %v311_v39 = vpack.c.bf16 %v309_v37, %v307_v36 }
  0x18   : > { %774 = vmatprep.subr.bf16.mxu0 %v834_v14  ;;  %v310_v43 = vpack.c.bf16 %v308_v41, %v306_v40 }
  0x19   : > { %479 = vmatprep.mubr.bf16.mxu0 %v311_v39 }
  0x1b   : > { %775 = vmatpush3.bf16.msra.mxu0 %v835_v25 }
  0x1c   : > { %776 = vmatprep.subr.bf16.mxu0 %v836_v30 }
  0x1f   : > { %777 = vmatpush3.bf16.msra.mxu0 %v837_v35 }
  0x20   : > { %778 = vmatprep.subr.bf16.mxu0 %v838_v38 }
  0x23   : > { %779 = vmatpush3.bf16.msra.mxu0 %v839_v42 }
  0x26   : > { %480 = vmatmul.mubr.bf16.vlgmr.msra.gmra.mrb[0].mxu0 %v310_v43 }
  0xf9   : > { %v780_v46 = vpop.f32.mrb[0].mxu0 }
  0xfa   : > { %v781_v48 = vpop.f32.mrb[1].mxu0 }
  0xfb   : > { %v782_v49 = vadd.f32 %v781_v48, %v780_v46  ;;  %v783_v50 = vpop.f32.mrb[2].mxu0 }
  0xfc   : > { %v784_v51 = vpop.f32.mrb[3].mxu0 }
  0xfd   : > { %v482_v52 = vadd.f32 %v782_v49, %v742_v47  ;;  %v785_v53 = vadd.f32 %v784_v51, %v783_v50 }
  0xff   : > { %488 = vst [vmem:[%s263_s27] sm:$0xff] %v482_v52  ;;  %v485_v54 = vadd.f32 %v785_v53, %v742_v47  ;;  %v564_v55 = vmul.f32 %v482_v52, %v482_v52 }
 0x101   : > { %489 = vst [vmem:[%s263_s27 + $0x8] sm:$0xff] %v485_v54  ;;  %v565_v56 = vmul.f32 %v485_v54, %v485_v54  ;;  %v807_v57 = vpack.c.bf16 %v485_v54, %v482_v52 }
 0x103   : > { %808 = vmatpush3.bf16.msra.mxu1 %v807_v57  ;;  %v810_v58 = vpack.c.bf16 %v565_v56, %v564_v55 }
 0x104   : > { %809 = vmatprep.subr.bf16.mxu1 %v848_v44 }
 0x106   : > { %797 = vmatmul.mubr.msk.f32.vlgmr.msra.gmra.mrb[0].mxu1 %vm490_vm1, %v851_v59 }
 0x107   : > { %811 = vmatpush3.bf16.msra.mxu1 %v810_v58  ;;  %803 = vmatprep.mubr.msk.f32.mxu1 %vm849_vm0, %v850_v45 }
 0x10a   : > { %804 = vmatmul.mubr.msk.f32.vlgmr.msra.gmra.mrb[2].mxu1 %vm490_vm1, %v851_v59 }
 0x1d9   : > { %v560_v60 = vpop.f32.mrb[0].mxu1 }
 0x1da   : > { %v798_v61 = vpop.f32.mrb[1].mxu1 }
 0x1dd   : > { %v632_v62 = vpop.f32.mrb[2].mxu1 }
 0x1de   : > { %v637_v63 = vrot.slane %v632_v62, 7  ;;  %v805_v0 = vpop.f32.mrb[3].mxu1 }
 0x1e0   : > { %v640_v1 = vsel %vm639_vm2, %v560_v60, %v637_v63 }
 0x1e1   : > { %v642_v2 = vsel %vm641_vm3, %v640_v1, 0.0 }
 0x1e2   : > { %643 = vst [vmem:[%s268_s30] sm:$0xff] %v642_v2 }
 0x1e3 PF: > { %s17_s21 = sadd.s32 1, %s846_s21  }
 0x1e4   : > { %p14_p5 = scmp.ge.s32.totalorder %s17_s21, 6  }
 0x1e6   :  { %16 = sbr.rel (!%p14_p5) target bundleno = 1 (0x1), region = 82 }

// kernel: fc_trajectory_decoder.7
= control target key start
LH: loop header
LB: loop body
LE: loop exit
PB: predicated region body
PF: predicated region fallthrough
CT: control target
= control target key end

     0   :  { %s507_s18 = smov 0   ;;  %s552_s0 = inlined_call_operand.vmem [shape: f32[64,64], index: 0, kind: input, shape index: {}]   ;;  %s553_s1 = inlined_call_operand.vmem [shape: f32[1,64], index: 1, kind: input, shape index: {}]   ;;  %s554_s2 = inlined_call_operand.vmem [shape: f32[1,64], index: 2, kind: input, shape index: {}]   ;;  %s555_s3 = inlined_call_operand.vmem [shape: bf16[64,3], index: 3, kind: input, shape index: {}]   ;;  %s556_s4 = inlined_call_operand.vmem [shape: f32[1,3], index: 4, kind: input, shape index: {}]   ;;  %s557_s5 = inlined_call_operand.vmem [shape: f32[64,3], index: 5, kind: output, shape index: {}]  }
   0x1 LB: > { %s407_s19 = sadd.s32 4294967295, %s473_s18   ;;  %p411_p0 = scmp.ge.s32.totalorder %s473_s18, 1  ;;  %s473_s18 = sphi %s507_s18, %s15_s18  }
   0x2   : > { %p188_p1 = scmp.lt.s32.totalorder %s473_s18, 5 }
   0x4   : > { %p189_p2 = pnand %p411_p0, %p188_p1 }
   0x5   : > { %v455_v0 = vld [vmem:[%s555_s3] sm:$0xff] (!%p189_p2)   ;;  %v475_v1 = vmov (!%p189_p2), 0.0   ;;  %v456_v2 = vld [vmem:[%s555_s3 + $0x8] sm:$0xff] (!%p189_p2)   ;;  %vm476_vm0 = vmmov (!%p189_p2), 0   ;;  %s412_s24 = sshll.u32 (!%p189_p2), %s407_s19, 1  ;;  %v457_v3 = vld [vmem:[%s555_s3 + $0x10] sm:$0xff] (!%p189_p2)  }
   0x6   : > { %192 = sbr.rel (%p189_p2) target bundleno = 268 (0x10c), region = 40  ;;  %433 = vmatprep.subr.bf16.mxu0 (!%p189_p2), %v475_v1  ;;  %441 = vmatprep.mubr.msk.bf16.mxu0 (!%p189_p2), %vm476_vm0, %v475_v1  ;;  %p217_p3 = scmp.lt.s32.totalorder (!%p189_p2), %s412_s24, 7  ;;  %v416_v4 = vld [vmem:[%s553_s1] ss:$0 sm:$0xff] (!%p189_p2)  ;;  %v458_v8 = vld [vmem:[%s555_s3 + $0x18] sm:$0xff] (!%p189_p2)   ;;  %vm291_vm1 = vcmask (!%p189_p2), 523264  }
   0x7   : > { %434 = vmatpush3.bf16.msra.mxu0 (!%p189_p2), %v455_v0  ;;  %v417_v7 = vld [vmem:[%s554_s2] ss:$0 sm:$0xff] (!%p189_p2)  ;;  %vm348_vm2 = vcmask (!%p189_p2), 23552  }
   0x8   : > { %435 = vmatprep.subr.bf16.mxu0 (!%p189_p2), %v475_v1  ;;  %v418_v16 = vld [vmem:[%s556_s4] ss:$0 sm:$0xff] (!%p189_p2) }
   0xb   : > { %436 = vmatpush3.bf16.msra.mxu0 (!%p189_p2), %v456_v2 }
   0xc   : > { %437 = vmatprep.subr.bf16.mxu0 (!%p189_p2), %v475_v1 }
   0xd   : > { %s559_s24 = smov (!%p217_p3, %s412_s24), 7 }
   0xe   : > { %s413_s27 = sshll.u32 %s559_s24, 3 }
   0xf   : > { %s220_s7 = scalar_lea.vmem %s552_s0, %s413_s27  ;;  %438 = vmatpush3.bf16.msra.mxu0 %v457_v3  ;;  %s226_s16 = scalar_lea.vmem %s557_s5, %s413_s27 }
  0x10   : > { %v229_v5 = vld [vmem:[%s220_s7] sm:$0xff]  ;;  %v230_v6 = vld [vmem:[%s220_s7 + $0x8] sm:$0xff]  ;;  %439 = vmatprep.subr.bf16.mxu0 %v475_v1 }
  0x11   : > { %v238_v9 = vmul.f32 %v416_v4, %v229_v5  ;;  %v239_v10 = vmul.f32 %v416_v4, %v230_v6 }
  0x13   : > { %v247_v11 = vadd.f32 %v417_v7, %v238_v9  ;;  %v248_v12 = vadd.f32 %v417_v7, %v239_v10  ;;  %440 = vmatpush3.bf16.msra.mxu0 %v458_v8 }
  0x15   : > { %v249_v13 = vmax.f32 %v247_v11, 0.0  ;;  %v250_v14 = vmax.f32 %v248_v12, 0.0 }
  0x17   : > { %v251_v15 = vpack.c.bf16 %v250_v14, %v249_v13 }
  0x19   : > { %442 = vmatmul.mubr.msk.bf16.vlgmr.msra.gmra.mrb[0].mxu0 %vm291_vm1, %v251_v15 }
  0xec   : > { %v329_v17 = vpop.f32.mrb[0].mxu0 }
  0xed   : > { %v330_v18 = vadd.f32 %v418_v16, %v329_v17  ;;  %v443_v19 = vpop.f32.mrb[1].mxu0 }
  0xee   : > { %v332_v20 = vpop.f32.mrb[2].mxu0 }
  0xef   : > { %v424_v21 = vmul.f32 -1.442695, %v330_v18  ;;  %v333_v22 = vadd.f32 %v418_v16, %v332_v20  ;;  %v444_v23 = vpop.f32.mrb[3].mxu0 }
  0xf1   : > { %459 = vpow2.f32 %v424_v21  ;;  %v425_v24 = vmul.f32 -1.442695, %v333_v22 }
  0xf3   : > { %461 = vpow2.f32 %v425_v24 }
  0xfb   : > { %v460_v25 = vpop.eup %459 }
  0xfc   : > { %v342_v26 = vadd.f32 1.0, %v460_v25 }
  0xfd   : > { %v462_v27 = vpop.eup %461 }
  0xfe   : > { %463 = vrcp.f32 %v342_v26  ;;  %v343_v28 = vadd.f32 1.0, %v462_v27 }
 0x100   : > { %465 = vrcp.f32 %v343_v28 }
 0x108   : > { %v464_v29 = vpop.eup %463 }
 0x109   : > { %349 = vst.msk [vmem:[%s226_s16] sm:$0xff] %vm348_vm2, %v464_v29 }
 0x10a   : > { %v466_v30 = vpop.eup %465 }
 0x10b   : > { %350 = vst.msk [vmem:[%s226_s16 + $0x8] sm:$0xff] %vm348_vm2, %v466_v30 }
 0x10c PF: > { %s15_s18 = sadd.s32 1, %s473_s18  }
 0x10d   : > { %p12_p4 = scmp.ge.s32.totalorder %s15_s18, 6  }
 0x10f   :  { %14 = sbr.rel (!%p12_p4) target bundleno = 1 (0x1), region = 70 }

// kernel: fc_trajectory_decoder.4
= control target key start
LH: loop header
LB: loop body
LE: loop exit
PB: predicated region body
PF: predicated region fallthrough
CT: control target
= control target key end

     0   :  { %s2021_s15 = smov 0   ;;  %s2467_s0 = inlined_call_operand.vmem [shape: bf16[64,1058], index: 0, kind: input, shape index: {}]   ;;  %s2468_s1 = inlined_call_operand.vmem [shape: bf16[1058,256], index: 1, kind: input, shape index: {}]   ;;  %s2469_s2 = inlined_call_operand.vmem [shape: f32[1,256], index: 2, kind: input, shape index: {}]   ;;  %s2470_s3 = inlined_call_operand.vmem [shape: f32[64,256], index: 3, kind: output, shape index: {0}]   ;;  %s2471_s4 = inlined_call_operand.vmem [shape: f32[4,8,256], index: 4, kind: output, shape index: {1}]  }
   0x1 LB: > { %s2027_s16 = sadd.s32 4294967295, %s1991_s15   ;;  %p1573_p0 = scmp.ge.s32.totalorder %s1991_s15, 1  ;;  %s1991_s15 = sphi %s2021_s15, %s15_s15  }
   0x2   : > { %p167_p1 = scmp.lt.s32.totalorder %s1991_s15, 5 }
   0x4   : > { %p168_p2 = pnand %p1573_p0, %p167_p1 }
   0x5   : > { %v1772_v0 = vld [vmem:[%s2468_s1 + $0x4] ss:$8 sps:$4 sm:$0xff] (!%p168_p2)   ;;  %v1776_v2 = vld [vmem:[%s2468_s1] ss:$8 sps:$4 sm:$0xff] (!%p168_p2)   ;;  %v1778_v4 = vld [vmem:[%s2468_s1 + $0x14] ss:$8 sps:$4 sm:$0xff] (!%p168_p2)  }
   0x6   : > { %171 = sbr.rel (%p168_p2) target bundleno = 592 (0x250), region = 32  ;;  %v1774_v1 = vld [vmem:[%s2468_s1 + $0x204] ss:$8 sps:$4 sm:$0xff] (!%p168_p2)   ;;  %1096 = vmatprep.subr.bf16.mxu1 (!%p168_p2), %v1772_v0  ;;  %v1777_v3 = vld [vmem:[%s2468_s1 + $0x200] ss:$8 sps:$4 sm:$0xff] (!%p168_p2)   ;;  %s1574_s29 = sshll.u32 (!%p168_p2), %s2027_s16, 1 }
   0x7   : > { %1182 = vmatprep.subr.bf16.mxu0 (!%p168_p2), %v1774_v1  ;;  %1097 = vmatpush1.bf16.msra.mxu1 (!%p168_p2), %v1776_v2  ;;  %v1780_v5 = vld [vmem:[%s2468_s1 + $0x214] ss:$8 sps:$4 sm:$0xff] (!%p168_p2)   ;;  %v1782_v6 = vld [vmem:[%s2468_s1 + $0x10] ss:$8 sps:$4 sm:$0xff] (!%p168_p2)   ;;  %v1784_v8 = vld [vmem:[%s2468_s1 + $0x24] ss:$8 sps:$4 sm:$0xff] (!%p168_p2)  }
   0x8   : > { %1183 = vmatpush1.bf16.msra.mxu0 (!%p168_p2), %v1777_v3  ;;  %1098 = vmatprep.subr.bf16.mxu1 (!%p168_p2), %v1778_v4  ;;  %v1783_v7 = vld [vmem:[%s2468_s1 + $0x210] ss:$8 sps:$4 sm:$0xff] (!%p168_p2)   ;;  %v1786_v9 = vld [vmem:[%s2468_s1 + $0x224] ss:$8 sps:$4 sm:$0xff] (!%p168_p2)   ;;  %v1788_v10 = vld [vmem:[%s2468_s1 + $0x20] ss:$8 sps:$4 sm:$0xff] (!%p168_p2)  }
   0x9   : > { %1184 = vmatprep.subr.bf16.mxu0 (!%p168_p2), %v1780_v5  ;;  %v1789_v11 = vld [vmem:[%s2468_s1 + $0x220] ss:$8 sps:$4 sm:$0xff] (!%p168_p2)   ;;  %v1790_v12 = vld [vmem:[%s2468_s1 + $0x34] ss:$8 sps:$4 sm:$0xff] (!%p168_p2)   ;;  %v1794_v14 = vld [vmem:[%s2468_s1 + $0x30] ss:$8 sps:$4 sm:$0xff] (!%p168_p2)  }
   0xa   : > { %v1792_v13 = vld [vmem:[%s2468_s1 + $0x234] ss:$8 sps:$4 sm:$0xff] (!%p168_p2)   ;;  %v1795_v15 = vld [vmem:[%s2468_s1 + $0x230] ss:$8 sps:$4 sm:$0xff] (!%p168_p2)   ;;  %v1796_v16 = vld [vmem:[%s2468_s1 + $0x44] ss:$8 sps:$4 sm:$0xff] (!%p168_p2)  }
   0xb   : > { %1099 = vmatpush1.bf16.msra.mxu1 (!%p168_p2), %v1782_v6  ;;  %v1798_v17 = vld [vmem:[%s2468_s1 + $0x244] ss:$8 sps:$4 sm:$0xff] (!%p168_p2)   ;;  %v1800_v18 = vld [vmem:[%s2468_s1 + $0x40] ss:$8 sps:$4 sm:$0xff] (!%p168_p2)   ;;  %v1802_v20 = vld [vmem:[%s2468_s1 + $0x54] ss:$8 sps:$4 sm:$0xff] (!%p168_p2)  }
   0xc   : > { %1185 = vmatpush1.bf16.msra.mxu0 (!%p168_p2), %v1783_v7  ;;  %1100 = vmatprep.subr.bf16.mxu1 (!%p168_p2), %v1784_v8  ;;  %v1801_v19 = vld [vmem:[%s2468_s1 + $0x240] ss:$8 sps:$4 sm:$0xff] (!%p168_p2)   ;;  %v1804_v21 = vld [vmem:[%s2468_s1 + $0x254] ss:$8 sps:$4 sm:$0xff] (!%p168_p2)   ;;  %v1806_v22 = vld [vmem:[%s2468_s1 + $0x50] ss:$8 sps:$4 sm:$0xff] (!%p168_p2)  }
   0xd   : > { %1186 = vmatprep.subr.bf16.mxu0 %v1786_v9  ;;  %v1807_v23 = vld [vmem:[%s2468_s1 + $0x250] ss:$8 sps:$4 sm:$0xff]   ;;  %v1808_v24 = vld [vmem:[%s2468_s1 + $0x64] ss:$8 sps:$4 sm:$0xff]   ;;  %v1812_v26 = vld [vmem:[%s2468_s1 + $0x60] ss:$8 sps:$4 sm:$0xff]  }
   0xe   : > { %v1810_v25 = vld [vmem:[%s2468_s1 + $0x264] ss:$8 sps:$4 sm:$0xff]   ;;  %v1813_v27 = vld [vmem:[%s2468_s1 + $0x260] ss:$8 sps:$4 sm:$0xff]   ;;  %v1814_v28 = vld [vmem:[%s2468_s1 + $0x74] ss:$8 sps:$4 sm:$0xff]  }
   0xf   : > { %1101 = vmatpush1.bf16.msra.mxu1 %v1788_v10  ;;  %v1816_v29 = vld [vmem:[%s2468_s1 + $0x274] ss:$8 sps:$4 sm:$0xff]   ;;  %v1818_v30 = vld [vmem:[%s2468_s1 + $0x70] ss:$8 sps:$4 sm:$0xff]   ;;  %v1820_v32 = vld [vmem:[%s2468_s1 + $0x84] ss:$8 sps:$4 sm:$0xff]  }
  0x10   : > { %1187 = vmatpush1.bf16.msra.mxu0 %v1789_v11  ;;  %1102 = vmatprep.subr.bf16.mxu1 %v1790_v12  ;;  %v1819_v31 = vld [vmem:[%s2468_s1 + $0x270] ss:$8 sps:$4 sm:$0xff]   ;;  %p201_p3 = scmp.lt.s32.totalorder %s1574_s29, 7  ;;  %v1822_v33 = vld [vmem:[%s2468_s1 + $0x284] ss:$8 sps:$4 sm:$0xff]   ;;  %vm1089_vm0 = vcmask 1040384  }
  0x11   : > { %1188 = vmatprep.subr.bf16.mxu0 %v1792_v13  ;;  %v1824_v34 = vld [vmem:[%s2468_s1 + $0x80] ss:$8 sps:$4 sm:$0xff]   ;;  %v1826_v36 = vld [vmem:[%s2468_s1 + $0x94] ss:$8 sps:$4 sm:$0xff]   ;;  %v1830_v38 = vld [vmem:[%s2468_s1 + $0x90] ss:$8 sps:$4 sm:$0xff]  }
  0x12   : > { %v1825_v35 = vld [vmem:[%s2468_s1 + $0x280] ss:$8 sps:$4 sm:$0xff]   ;;  %s2473_s29 = smov (!%p201_p3, %s1574_s29), 7  ;;  %v1828_v37 = vld [vmem:[%s2468_s1 + $0x294] ss:$8 sps:$4 sm:$0xff]   ;;  %vm1085_vm1 = vcmask 277504  }
  0x13   : > { %1103 = vmatpush1.bf16.msra.mxu1 %v1794_v14  ;;  %v1831_v39 = vld [vmem:[%s2468_s1 + $0x290] ss:$8 sps:$4 sm:$0xff]   ;;  %v1832_v40 = vld [vmem:[%s2468_s1 + $0xa4] ss:$8 sps:$4 sm:$0xff]   ;;  %s1760_s28 = smul.u32 36, %s2473_s29  ;;  %vm1315_vm2 = vcmask 130048  }
  0x14   : > { %1189 = vmatpush1.bf16.msra.mxu0 %v1795_v15  ;;  %1104 = vmatprep.subr.bf16.mxu1 %v1796_v16  ;;  %v1834_v41 = vld [vmem:[%s2468_s1 + $0x2a4] ss:$8 sps:$4 sm:$0xff]   ;;  %v1836_v42 = vld [vmem:[%s2468_s1 + $0xa0] ss:$8 sps:$4 sm:$0xff]   ;;  %v1838_v44 = vld [vmem:[%s2468_s1 + $0xb4] ss:$8 sps:$4 sm:$0xff]  }
  0x15   : > { %1190 = vmatprep.subr.bf16.mxu0 %v1798_v17  ;;  %v1837_v43 = vld [vmem:[%s2468_s1 + $0x2a0] ss:$8 sps:$4 sm:$0xff]   ;;  %s2173_s14 = scalar_lea.vmem %s2467_s0, %s1760_s28  ;;  %v1840_v45 = vld [vmem:[%s2468_s1 + $0x2b4] ss:$8 sps:$4 sm:$0xff]   ;;  %v1842_v46 = vld [vmem:[%s2468_s1 + $0xb0] ss:$8 sps:$4 sm:$0xff]  }
  0x16   : > { %v1843_v47 = vld [vmem:[%s2468_s1 + $0x2b0] ss:$8 sps:$4 sm:$0xff]   ;;  %v1870_v48 = vld [vmem:[%s2173_s14 + $0x4] ss:$36 sps:$4 sm:$0xff]   ;;  %v1850_v54 = vld [vmem:[%s2468_s1 + $0xd4] ss:$8 sps:$4 sm:$0xff]  }
  0x17   : > { %1105 = vmatpush1.bf16.msra.mxu1 %v1800_v18  ;;  %v1844_v49 = vld [vmem:[%s2468_s1 + $0xc4] ss:$8 sps:$4 sm:$0xff]   ;;  %1128 = vmatprep.mubr.bf16.mxu1 %v1870_v48  ;;  %v1876_v51 = vld [vmem:[%s2173_s14 + $0x14] ss:$36 sps:$4 sm:$0xff]   ;;  %v1848_v52 = vld [vmem:[%s2468_s1 + $0xc0] ss:$8 sps:$4 sm:$0xff]  }
  0x18   : > { %1191 = vmatpush1.bf16.msra.mxu0 %v1801_v19  ;;  %1106 = vmatprep.subr.bf16.mxu1 %v1802_v20  ;;  %v1846_v50 = vld [vmem:[%s2468_s1 + $0x2c4] ss:$8 sps:$4 sm:$0xff]   ;;  %v1849_v53 = vld [vmem:[%s2468_s1 + $0x2c0] ss:$8 sps:$4 sm:$0xff]   ;;  %v1852_v55 = vld [vmem:[%s2468_s1 + $0x2d4] ss:$8 sps:$4 sm:$0xff]  }
  0x19   : > { %1192 = vmatprep.subr.bf16.mxu0 %v1804_v21  ;;  %1214 = vmatprep.mubr.bf16.mxu0 %v1876_v51  ;;  %v1854_v56 = vld [vmem:[%s2468_s1 + $0xd0] ss:$8 sps:$4 sm:$0xff]   ;;  %v1856_v58 = vld [vmem:[%s2468_s1 + $0xe4] ss:$8 sps:$4 sm:$0xff]   ;;  %v1860_v60 = vld [vmem:[%s2468_s1 + $0xe0] ss:$8 sps:$4 sm:$0xff]  }
  0x1a   : > { %v1855_v57 = vld [vmem:[%s2468_s1 + $0x2d0] ss:$8 sps:$4 sm:$0xff]   ;;  %v1858_v59 = vld [vmem:[%s2468_s1 + $0x2e4] ss:$8 sps:$4 sm:$0xff]   ;;  %v1861_v61 = vld [vmem:[%s2468_s1 + $0x2e0] ss:$8 sps:$4 sm:$0xff]  }
  0x1b   : > { %1107 = vmatpush1.bf16.msra.mxu1 %v1806_v22  ;;  %v1862_v62 = vld [vmem:[%s2468_s1 + $0xf4] ss:$8 sps:$4 sm:$0xff]   ;;  %v1866_v0 = vld [vmem:[%s2468_s1 + $0xf0] ss:$8 sps:$4 sm:$0xff]   ;;  %v1873_v2 = vld [vmem:[%s2468_s1 + $0x104] ss:$8 sps:$4 sm:$0xff]  }
  0x1c   : > { %1193 = vmatpush1.bf16.msra.mxu0 %v1807_v23  ;;  %1108 = vmatprep.subr.bf16.mxu1 %v1808_v24  ;;  %v1864_v63 = vld [vmem:[%s2468_s1 + $0x2f4] ss:$8 sps:$4 sm:$0xff]   ;;  %v1867_v1 = vld [vmem:[%s2468_s1 + $0x2f0] ss:$8 sps:$4 sm:$0xff]   ;;  %v1879_v3 = vld [vmem:[%s2468_s1 + $0x304] ss:$8 sps:$4 sm:$0xff]  }
  0x1d   : > { %1194 = vmatprep.subr.bf16.mxu0 %v1810_v25  ;;  %v1868_v4 = vld [vmem:[%s2173_s14] ss:$36 sps:$4 sm:$0xff]   ;;  %v1874_v6 = vld [vmem:[%s2173_s14 + $0x10] ss:$36 sps:$4 sm:$0xff]   ;;  %p214_p4 = scmp.lt.s32.totalorder %s2027_s16, 3  ;;  %vm1473_vm3 = vcmask 1041408  }
  0x1e   : > { %v1871_v5 = vld [vmem:[%s2468_s1 + $0x100] ss:$8 sps:$4 sm:$0xff]   ;;  %v1882_v8 = vld [vmem:[%s2468_s1 + $0x114] ss:$8 sps:$4 sm:$0xff]   ;;  %v1880_v10 = vld [vmem:[%s2468_s1 + $0x110] ss:$8 sps:$4 sm:$0xff]  }
  0x1f   : > { %1109 = vmatpush1.bf16.msra.mxu1 %v1812_v26  ;;  %v1877_v7 = vld [vmem:[%s2468_s1 + $0x300] ss:$8 sps:$4 sm:$0xff]   ;;  %v1885_v9 = vld [vmem:[%s2468_s1 + $0x314] ss:$8 sps:$4 sm:$0xff]   ;;  %v1883_v11 = vld [vmem:[%s2468_s1 + $0x310] ss:$8 sps:$4 sm:$0xff]  }
  0x20   : > { %1195 = vmatpush1.bf16.msra.mxu0 %v1813_v27  ;;  %1110 = vmatprep.subr.bf16.mxu1 %v1814_v28  ;;  %v1888_v12 = vld [vmem:[%s2468_s1 + $0x124] ss:$8 sps:$4 sm:$0xff]   ;;  %v1886_v14 = vld [vmem:[%s2468_s1 + $0x120] ss:$8 sps:$4 sm:$0xff]   ;;  %v1894_v16 = vld [vmem:[%s2468_s1 + $0x134] ss:$8 sps:$4 sm:$0xff]  }
  0x21   : > { %1196 = vmatprep.subr.bf16.mxu0 %v1816_v29  ;;  %v1891_v13 = vld [vmem:[%s2468_s1 + $0x324] ss:$8 sps:$4 sm:$0xff]   ;;  %v1889_v15 = vld [vmem:[%s2468_s1 + $0x320] ss:$8 sps:$4 sm:$0xff]   ;;  %v1897_v17 = vld [vmem:[%s2468_s1 + $0x334] ss:$8 sps:$4 sm:$0xff]  }
  0x22   : > { %v1892_v18 = vld [vmem:[%s2468_s1 + $0x130] ss:$8 sps:$4 sm:$0xff]   ;;  %v1900_v20 = vld [vmem:[%s2468_s1 + $0x144] ss:$8 sps:$4 sm:$0xff]   ;;  %v1898_v22 = vld [vmem:[%s2468_s1 + $0x140] ss:$8 sps:$4 sm:$0xff]  }
  0x23   : > { %1111 = vmatpush1.bf16.msra.mxu1 %v1818_v30  ;;  %v1895_v19 = vld [vmem:[%s2468_s1 + $0x330] ss:$8 sps:$4 sm:$0xff]   ;;  %v1903_v21 = vld [vmem:[%s2468_s1 + $0x344] ss:$8 sps:$4 sm:$0xff]   ;;  %v1901_v23 = vld [vmem:[%s2468_s1 + $0x340] ss:$8 sps:$4 sm:$0xff]  }
  0x24   : > { %1197 = vmatpush1.bf16.msra.mxu0 %v1819_v31  ;;  %1112 = vmatprep.subr.bf16.mxu1 %v1820_v32  ;;  %v1906_v24 = vld [vmem:[%s2468_s1 + $0x154] ss:$8 sps:$4 sm:$0xff]   ;;  %v1904_v26 = vld [vmem:[%s2468_s1 + $0x150] ss:$8 sps:$4 sm:$0xff]   ;;  %v1912_v28 = vld [vmem:[%s2468_s1 + $0x164] ss:$8 sps:$4 sm:$0xff]  }
  0x25   : > { %1198 = vmatprep.subr.bf16.mxu0 %v1822_v33  ;;  %v1909_v25 = vld [vmem:[%s2468_s1 + $0x354] ss:$8 sps:$4 sm:$0xff]   ;;  %v1907_v27 = vld [vmem:[%s2468_s1 + $0x350] ss:$8 sps:$4 sm:$0xff]   ;;  %v1915_v29 = vld [vmem:[%s2468_s1 + $0x364] ss:$8 sps:$4 sm:$0xff]  }
  0x26   : > { %v1910_v30 = vld [vmem:[%s2468_s1 + $0x160] ss:$8 sps:$4 sm:$0xff]   ;;  %v1918_v32 = vld [vmem:[%s2468_s1 + $0x174] ss:$8 sps:$4 sm:$0xff]   ;;  %s2475_s16 = smov (!%p214_p4, %s2027_s16), 3 }
  0x27   : > { %1113 = vmatpush1.bf16.msra.mxu1 %v1824_v34  ;;  %v1913_v31 = vld [vmem:[%s2468_s1 + $0x360] ss:$8 sps:$4 sm:$0xff]   ;;  %v1921_v33 = vld [vmem:[%s2468_s1 + $0x374] ss:$8 sps:$4 sm:$0xff]   ;;  %v1972_v34 = vld [vmem:[%s2173_s14 + $0xc] ss:$36 sps:$4 sm:$0xff]  }
  0x28   : > { %1199 = vmatpush1.bf16.msra.mxu0 %v1825_v35  ;;  %1114 = vmatprep.subr.bf16.mxu1 %v1826_v36  ;;  %v1975_v35 = vld [vmem:[%s2173_s14 + $0x1c] ss:$36 sps:$4 sm:$0xff]   ;;  %v1916_v36 = vld [vmem:[%s2468_s1 + $0x170] ss:$8 sps:$4 sm:$0xff]  }
  0x29   : > { %1200 = vmatprep.subr.bf16.mxu0 %v1828_v37  ;;  %v1919_v37 = vld [vmem:[%s2468_s1 + $0x370] ss:$8 sps:$4 sm:$0xff]   ;;  %v1934_v48 = vld [vmem:[%s2468_s1 + $0x1a0] ss:$8 sps:$4 sm:$0xff]   ;;  %v1945_v51 = vld [vmem:[%s2468_s1 + $0x3b4] ss:$8 sps:$4 sm:$0xff]  }
  0x2b   : > { %1115 = vmatpush1.bf16.msra.mxu1 %v1830_v38  ;;  %v1924_v38 = vld [vmem:[%s2468_s1 + $0x184] ss:$8 sps:$4 sm:$0xff]  }
  0x2c   : > { %1201 = vmatpush1.bf16.msra.mxu0 %v1831_v39  ;;  %1116 = vmatprep.subr.bf16.mxu1 %v1832_v40  ;;  %v1927_v39 = vld [vmem:[%s2468_s1 + $0x384] ss:$8 sps:$4 sm:$0xff]   ;;  %v1922_v40 = vld [vmem:[%s2468_s1 + $0x180] ss:$8 sps:$4 sm:$0xff]  }
  0x2d   : > { %1202 = vmatprep.subr.bf16.mxu0 %v1834_v41  ;;  %v1925_v41 = vld [vmem:[%s2468_s1 + $0x380] ss:$8 sps:$4 sm:$0xff]  }
  0x2f   : > { %1117 = vmatpush1.bf16.msra.mxu1 %v1836_v42  ;;  %v1930_v42 = vld [vmem:[%s2468_s1 + $0x194] ss:$8 sps:$4 sm:$0xff]  }
  0x30   : > { %1203 = vmatpush1.bf16.msra.mxu0 %v1837_v43  ;;  %1118 = vmatprep.subr.bf16.mxu1 %v1838_v44  ;;  %v1933_v43 = vld [vmem:[%s2468_s1 + $0x394] ss:$8 sps:$4 sm:$0xff]   ;;  %v1928_v44 = vld [vmem:[%s2468_s1 + $0x190] ss:$8 sps:$4 sm:$0xff]  }
  0x31   : > { %1204 = vmatprep.subr.bf16.mxu0 %v1840_v45  ;;  %v1931_v45 = vld [vmem:[%s2468_s1 + $0x390] ss:$8 sps:$4 sm:$0xff]  }
  0x33   : > { %1119 = vmatpush1.bf16.msra.mxu1 %v1842_v46  ;;  %v1936_v46 = vld [vmem:[%s2468_s1 + $0x1a4] ss:$8 sps:$4 sm:$0xff]  }
  0x34   : > { %1205 = vmatpush1.bf16.msra.mxu0 %v1843_v47  ;;  %1120 = vmatprep.subr.bf16.mxu1 %v1844_v49  ;;  %v1939_v47 = vld [vmem:[%s2468_s1 + $0x3a4] ss:$8 sps:$4 sm:$0xff]   ;;  %v1937_v49 = vld [vmem:[%s2468_s1 + $0x3a0] ss:$8 sps:$4 sm:$0xff]  }
  0x35   : > { %1206 = vmatprep.subr.bf16.mxu0 %v1846_v50  ;;  %v1942_v50 = vld [vmem:[%s2468_s1 + $0x1b4] ss:$8 sps:$4 sm:$0xff]  }
  0x37   : > { %1121 = vmatpush1.bf16.msra.mxu1 %v1848_v52  ;;  %v1940_v52 = vld [vmem:[%s2468_s1 + $0x1b0] ss:$8 sps:$4 sm:$0xff]  }
  0x38   : > { %1207 = vmatpush1.bf16.msra.mxu0 %v1849_v53  ;;  %1122 = vmatprep.subr.bf16.mxu1 %v1850_v54  ;;  %v1943_v53 = vld [vmem:[%s2468_s1 + $0x3b0] ss:$8 sps:$4 sm:$0xff]   ;;  %v1948_v54 = vld [vmem:[%s2468_s1 + $0x1c4] ss:$8 sps:$4 sm:$0xff]  }
  0x39   : > { %1208 = vmatprep.subr.bf16.mxu0 %v1852_v55  ;;  %v1951_v55 = vld [vmem:[%s2468_s1 + $0x3c4] ss:$8 sps:$4 sm:$0xff]  }
  0x3b   : > { %1123 = vmatpush1.bf16.msra.mxu1 %v1854_v56  ;;  %v1946_v56 = vld [vmem:[%s2468_s1 + $0x1c0] ss:$8 sps:$4 sm:$0xff]  }
  0x3c   : > { %1209 = vmatpush1.bf16.msra.mxu0 %v1855_v57  ;;  %1124 = vmatprep.subr.bf16.mxu1 %v1856_v58  ;;  %v1949_v57 = vld [vmem:[%s2468_s1 + $0x3c0] ss:$8 sps:$4 sm:$0xff]   ;;  %v1954_v58 = vld [vmem:[%s2468_s1 + $0x1d4] ss:$8 sps:$4 sm:$0xff]  }
  0x3d   : > { %1210 = vmatprep.subr.bf16.mxu0 %v1858_v59  ;;  %v1957_v59 = vld [vmem:[%s2468_s1 + $0x3d4] ss:$8 sps:$4 sm:$0xff]  }
  0x3f   : > { %1125 = vmatpush1.bf16.msra.mxu1 %v1860_v60  ;;  %v1952_v60 = vld [vmem:[%s2468_s1 + $0x1d0] ss:$8 sps:$4 sm:$0xff]  }
  0x40   : > { %1211 = vmatpush1.bf16.msra.mxu0 %v1861_v61  ;;  %1126 = vmatprep.subr.bf16.mxu1 %v1862_v62  ;;  %v1955_v61 = vld [vmem:[%s2468_s1 + $0x3d0] ss:$8 sps:$4 sm:$0xff]   ;;  %v1960_v62 = vld [vmem:[%s2468_s1 + $0x1e4] ss:$8 sps:$4 sm:$0xff]  }
  0x41   : > { %1212 = vmatprep.subr.bf16.mxu0 %v1864_v63  ;;  %v1963_v63 = vld [vmem:[%s2468_s1 + $0x3e4] ss:$8 sps:$4 sm:$0xff]  }
  0x43   : > { %1127 = vmatpush1.bf16.msra.mxu1 %v1866_v0  ;;  %v1958_v0 = vld [vmem:[%s2468_s1 + $0x1e0] ss:$8 sps:$4 sm:$0xff]  }
  0x44   : > { %1213 = vmatpush1.bf16.msra.mxu0 %v1867_v1  ;;  %1139 = vmatprep.subr.bf16.mxu1 %v1873_v2  ;;  %v1961_v1 = vld [vmem:[%s2468_s1 + $0x3e0] ss:$8 sps:$4 sm:$0xff]   ;;  %v1966_v2 = vld [vmem:[%s2468_s1 + $0x1f4] ss:$8 sps:$4 sm:$0xff]  }
  0x45   : > { %1225 = vmatprep.subr.bf16.mxu0 %v1879_v3  ;;  %v1969_v3 = vld [vmem:[%s2468_s1 + $0x3f4] ss:$8 sps:$4 sm:$0xff]  }
  0x46   : > { %1129 = vmatmul.mubr.bf16.vlgmr.msra.gmra.mrb[0].mxu1 %v1868_v4  ;;  %v1964_v4 = vld [vmem:[%s2468_s1 + $0x1f0] ss:$8 sps:$4 sm:$0xff]  }
  0x47   : > { %1215 = vmatmul.mubr.bf16.vlgmr.msra.gmra.mrb[0].mxu0 %v1874_v6  ;;  %1140 = vmatpush1.bf16.msra.mxu1 %v1871_v5  ;;  %v1967_v5 = vld [vmem:[%s2468_s1 + $0x3f0] ss:$8 sps:$4 sm:$0xff]   ;;  %v1978_v6 = vld [vmem:[%s2468_s1 + $0x404] ss:$8 sps:$4 sm:$0xff]  }
  0x48   : > { %1226 = vmatpush1.bf16.msra.mxu0 %v1877_v7  ;;  %1141 = vmatprep.subr.bf16.mxu1 %v1882_v8  ;;  %v1970_v7 = vld [vmem:[%s2173_s14 + $0x8] ss:$36 sps:$4 sm:$0xff]   ;;  %v1973_v8 = vld [vmem:[%s2173_s14 + $0x18] ss:$36 sps:$4 sm:$0xff]  }
  0x49   : > { %1227 = vmatprep.subr.bf16.mxu0 %v1885_v9  ;;  %1171 = vmatprep.mubr.bf16.mxu1 %v1972_v34  ;;  %v1976_v9 = vld [vmem:[%s2468_s1 + $0x400] ss:$8 sps:$4 sm:$0xff]  }
  0x4a   : > { %1257 = vmatprep.mubr.bf16.mxu0 %v1975_v35 }
  0x4b   : > { %1142 = vmatpush1.bf16.msra.mxu1 %v1880_v10  ;;  %v1981_v10 = vld [vmem:[%s2468_s1 + $0x414] ss:$8 sps:$4 sm:$0xff]  }
  0x4c   : > { %1228 = vmatpush1.bf16.msra.mxu0 %v1883_v11  ;;  %1143 = vmatprep.subr.bf16.mxu1 %v1888_v12  ;;  %v362_v11 = vld [vmem:[%s2468_s1 + $0x420] sm:$0x11]  ;;  %v1979_v12 = vld [vmem:[%s2468_s1 + $0x410] ss:$8 sps:$4 sm:$0xff]  }
  0x4d   : > { %1229 = vmatprep.subr.bf16.mxu0 %v1891_v13  ;;  %v1993_v13 = vmov 0  }
  0x4f   : > { %1144 = vmatpush1.bf16.msra.mxu1 %v1886_v14  ;;  %v1723_v14 = vcombine.high %v362_v11, %v362_v11 }
  0x50   : > { %1230 = vmatpush1.bf16.msra.mxu0 %v1889_v15  ;;  %1145 = vmatprep.subr.bf16.mxu1 %v1894_v16  ;;  %v1722_v15 = vcombine.low %v362_v11, %v362_v11 }
  0x51   : > { %1231 = vmatprep.subr.bf16.mxu0 %v1897_v17  ;;  %v1984_v17 = vld [vmem:[%s2173_s14 + $0x20] ss:$36 sps:$4 sm:$0xff]   ;;  %s1730_s14 = sshll.u32 %s2473_s29, 4  ;;  %s1731_s29 = sshll.u32 %s2475_s16, 4 }
  0x52   : > { %v1091_v16 = vsel %vm1089_vm0, %v1722_v15, 0  ;;  %s212_s21 = scalar_lea.vmem %s2470_s3, %s1730_s14  ;;  %s218_s24 = scalar_lea.vmem %s2471_s4, %s1731_s29 }
  0x53   : > { %1146 = vmatpush1.bf16.msra.mxu1 %v1892_v18  ;;  %v1994_v18 = vmov 0.0  }
  0x54   : > { %1232 = vmatpush1.bf16.msra.mxu0 %v1895_v19  ;;  %1147 = vmatprep.subr.bf16.mxu1 %v1900_v20  ;;  %v365_v19 = vlaneseq }
  0x55   : > { %1233 = vmatprep.subr.bf16.mxu0 %v1903_v21 }
  0x56   : > { %v366_v20 = vshrl.u32 %v365_v19, 7 }
  0x57   : > { %1148 = vmatpush1.bf16.msra.mxu1 %v1898_v22 }
  0x58   : > { %1234 = vmatpush1.bf16.msra.mxu0 %v1901_v23  ;;  %1149 = vmatprep.subr.bf16.mxu1 %v1906_v24  ;;  %v367_v24 = vsub.s32 0, %v366_v20 }
  0x59   : > { %1235 = vmatprep.subr.bf16.mxu0 %v1909_v25 }
  0x5b   : > { %1150 = vmatpush1.bf16.msra.mxu1 %v1904_v26  ;;  %v363_v26 = vld [vmem:[%s2469_s2] sm:$0x3] }
  0x5c   : > { %1236 = vmatpush1.bf16.msra.mxu0 %v1907_v27  ;;  %1151 = vmatprep.subr.bf16.mxu1 %v1912_v28  ;;  %v371_v27 = vsub.s32 1, %v366_v20  ;;  %v368_v28 = vrot.slane %v363_v26, %v367_v24 }
  0x5d   : > { %1237 = vmatprep.subr.bf16.mxu0 %v1915_v29 }
  0x5e   : > { %v372_v29 = vrot.slane %v363_v26, %v371_v27 }
  0x5f   : > { %1152 = vmatpush1.bf16.msra.mxu1 %v1910_v30 }
  0x60   : > { %1238 = vmatpush1.bf16.msra.mxu0 %v1913_v31  ;;  %1153 = vmatprep.subr.bf16.mxu1 %v1918_v32 }
  0x61   : > { %1239 = vmatprep.subr.bf16.mxu0 %v1921_v33 }
  0x63   : > { %1154 = vmatpush1.bf16.msra.mxu1 %v1916_v36 }
  0x64   : > { %1240 = vmatpush1.bf16.msra.mxu0 %v1919_v37  ;;  %1155 = vmatprep.subr.bf16.mxu1 %v1924_v38 }
  0x65   : > { %1241 = vmatprep.subr.bf16.mxu0 %v1927_v39 }
  0x67   : > { %1156 = vmatpush1.bf16.msra.mxu1 %v1922_v40 }
  0x68   : > { %1242 = vmatpush1.bf16.msra.mxu0 %v1925_v41  ;;  %1157 = vmatprep.subr.bf16.mxu1 %v1930_v42 }
  0x69   : > { %1243 = vmatprep.subr.bf16.mxu0 %v1933_v43 }
  0x6b   : > { %1158 = vmatpush1.bf16.msra.mxu1 %v1928_v44 }
  0x6c   : > { %1244 = vmatpush1.bf16.msra.mxu0 %v1931_v45  ;;  %1159 = vmatprep.subr.bf16.mxu1 %v1936_v46 }
  0x6d   : > { %1245 = vmatprep.subr.bf16.mxu0 %v1939_v47 }
  0x6f   : > { %1160 = vmatpush1.bf16.msra.mxu1 %v1934_v48 }
  0x70   : > { %1246 = vmatpush1.bf16.msra.mxu0 %v1937_v49  ;;  %1161 = vmatprep.subr.bf16.mxu1 %v1942_v50  ;;  %v1995_v50 = vmov 1.0  }
  0x71   : > { %1247 = vmatprep.subr.bf16.mxu0 %v1945_v51 }
  0x73   : > { %1162 = vmatpush1.bf16.msra.mxu1 %v1940_v52 }
  0x74   : > { %1248 = vmatpush1.bf16.msra.mxu0 %v1943_v53  ;;  %1163 = vmatprep.subr.bf16.mxu1 %v1948_v54 }
  0x75   : > { %1249 = vmatprep.subr.bf16.mxu0 %v1951_v55 }
  0x77   : > { %1164 = vmatpush1.bf16.msra.mxu1 %v1946_v56 }
  0x78   : > { %1250 = vmatpush1.bf16.msra.mxu0 %v1949_v57  ;;  %1165 = vmatprep.subr.bf16.mxu1 %v1954_v58 }
  0x79   : > { %1251 = vmatprep.subr.bf16.mxu0 %v1957_v59 }
  0x7b   : > { %1166 = vmatpush1.bf16.msra.mxu1 %v1952_v60 }
  0x7c   : > { %1252 = vmatpush1.bf16.msra.mxu0 %v1955_v61  ;;  %1167 = vmatprep.subr.bf16.mxu1 %v1960_v62 }
  0x7d   : > { %1253 = vmatprep.subr.bf16.mxu0 %v1963_v63 }
  0x7f   : > { %1168 = vmatpush1.bf16.msra.mxu1 %v1958_v0 }
  0x80   : > { %1254 = vmatpush1.bf16.msra.mxu0 %v1961_v1  ;;  %1169 = vmatprep.subr.bf16.mxu1 %v1966_v2 }
  0x81   : > { %1255 = vmatprep.subr.bf16.mxu0 %v1969_v3 }
  0x83   : > { %1170 = vmatpush1.bf16.msra.mxu1 %v1964_v4 }
  0x84   : > { %1256 = vmatpush1.bf16.msra.mxu0 %v1967_v5 }
  0x85   : > { %1268 = vmatprep.subr.bf16.mxu0 %v1978_v6 }
  0x86   : > { %1172 = vmatmul.mubr.bf16.vlgmr.msra.gmra.mrb[0].mxu1 %v1970_v7 }
  0x87   : > { %1258 = vmatmul.mubr.bf16.vlgmr.msra.gmra.mrb[0].mxu0 %v1973_v8  ;;  %1383 = vmatprep.mubr.f32.mxu1 %v1994_v18 }
  0x88   : > { %1269 = vmatpush1.bf16.msra.mxu0 %v1976_v9  ;;  %1300 = vmatprep.mubr.bf16.mxu0 %v1993_v13 }
  0x89   : > { %1270 = vmatprep.subr.bf16.mxu0 %v1981_v10 }
  0x8c   : > { %1271 = vmatpush1.bf16.msra.mxu0 %v1979_v12 }
  0x8d   : > { %1724 = vmatprep.subr.msk.bf16.mxu0 %vm1089_vm0, %v1723_v14 }
  0x90   : > { %1273 = vmatpush1.bf16.msra.mxu0 %v1091_v16 }
  0x93   : > { %1725 = vmatmul.mubr.msk.bf16.vlgmr.msra.gmra.mrb[0].mxu0 %vm1085_vm1, %v1984_v17 }
 0x159   : > { %v1173_v21 = vpop.f32.mrb[0].mxu1 }
 0x15a   : > { %v1175_v22 = vpop.f32.mrb[1].mxu1  ;;  %v1740_v30 = vadd.f32 %v1173_v21, %v368_v28 }
 0x15b   : > { %v1177_v23 = vpop.f32.mrb[2].mxu1  ;;  %v1742_v31 = vadd.f32 %v1175_v22, %v372_v29 }
 0x15c   : > { %v1179_v25 = vpop.f32.mrb[3].mxu1  ;;  %v1744_v33 = vadd.f32 %v1177_v23, %v368_v28 }
 0x15d   : > { %v1746_v36 = vadd.f32 %v1179_v25, %v372_v29 }
 0x166   : > { %v1302_v32 = vpop.f32.mrb[0].mxu0 }
 0x167   : > { %v1741_v34 = vadd.f32 %v1740_v30, %v1302_v32  ;;  %v1304_v35 = vpop.f32.mrb[1].mxu0 }
 0x168   : > { %v1743_v37 = vadd.f32 %v1742_v31, %v1304_v35  ;;  %v1306_v38 = vpop.f32.mrb[2].mxu0 }
 0x169   : > { %1311 = vst [vmem:[%s212_s21] sm:$0xff] %v1741_v34  ;;  %v1745_v39 = vadd.f32 %v1744_v33, %v1306_v38  ;;  %v1308_v40 = vpop.f32.mrb[3].mxu0  ;;  %v1390_v42 = vmul.f32 %v1741_v34, %v1741_v34 }
 0x16a   : > { %1312 = vst [vmem:[%s212_s21 + $0x8] sm:$0xff] %v1743_v37  ;;  %v1747_v41 = vadd.f32 %v1746_v36, %v1308_v40  ;;  %v1391_v45 = vmul.f32 %v1743_v37, %v1743_v37 }
 0x16b   : > { %1313 = vst [vmem:[%s212_s21 + $0x10] sm:$0xff] %v1745_v39  ;;  %v1734_v43 = vpack.c.bf16 %v1745_v39, %v1741_v34  ;;  %v1392_v44 = vmul.f32 %v1745_v39, %v1745_v39 }
 0x16c   : > { %1314 = vst [vmem:[%s212_s21 + $0x18] sm:$0xff] %v1747_v41  ;;  %v1393_v46 = vmul.f32 %v1747_v41, %v1747_v41  ;;  %v1732_v47 = vpack.c.bf16 %v1747_v41, %v1743_v37 }
 0x16d   : > { %v1738_v48 = vpack.c.bf16 %v1392_v44, %v1390_v42 }
 0x16e   : > { %1733 = vmatprep.subr.bf16.mxu1 %v1732_v47  ;;  %v1736_v49 = vpack.c.bf16 %v1393_v46, %v1391_v45 }
 0x16f   : > { %1735 = vmatpush1.bf16.msra.mxu1 %v1734_v43 }
 0x170   : > { %1737 = vmatprep.subr.bf16.mxu1 %v1736_v49 }
 0x172   : > { %1726 = vmatmul.mubr.msk.f32.vlgmr.msra.gmra.mrb[4].mxu1 %vm1315_vm2, %v1995_v50 }
 0x173   : > { %1739 = vmatpush1.bf16.msra.mxu1 %v1738_v48  ;;  %1458 = vmatprep.mubr.f32.mxu1 %v1994_v18 }
 0x176   : > { %1727 = vmatmul.mubr.msk.f32.vlgmr.msra.gmra.mrb[6].mxu1 %vm1315_vm2, %v1995_v50 }
 0x245   : > { %v1385_v51 = vpop.f32.mrb[4].mxu1 }
 0x246   : > { %v1387_v52 = vpop.f32.mrb[5].mxu1 }
 0x249   : > { %v1460_v53 = vpop.f32.mrb[6].mxu1 }
 0x24a   : > { %v1467_v54 = vrot.slane %v1460_v53, 7  ;;  %v1462_v55 = vpop.f32.mrb[7].mxu1 }
 0x24b   : > { %v1468_v56 = vrot.slane %v1462_v55, 7 }
 0x24c   : > { %v1471_v57 = vsel %vm1089_vm0, %v1385_v51, %v1467_v54 }
 0x24d   : > { %v1474_v58 = vsel %vm1473_vm3, %v1471_v57, 0.0  ;;  %v1472_v59 = vsel %vm1089_vm0, %v1387_v52, %v1468_v56 }
 0x24e   : > { %1476 = vst [vmem:[%s218_s24] sm:$0xff] %v1474_v58  ;;  %v1475_v60 = vsel %vm1473_vm3, %v1472_v59, 0.0 }
 0x24f   : > { %1477 = vst [vmem:[%s218_s24 + $0x8] sm:$0xff] %v1475_v60 }
 0x250 PF: > { %s15_s15 = sadd.s32 1, %s1991_s15  }
 0x251   : > { %p12_p5 = scmp.ge.s32.totalorder %s15_s15, 6  }
 0x253   :  { %14 = sbr.rel (!%p12_p5) target bundleno = 1 (0x1), region = 74 }

</bundles_post_ra>
